<compile_context>
chip_gen: v5e
topology: v5e:2x2
jax: 0.10.0
libtpu: 0.0.40
codegen_flags: <defaults>
</compile_context>

<pallas_src>
import functools

import jax
import jax.numpy as jnp
from jax.experimental import pallas as pl
from jax.experimental.pallas import tpu as pltpu


def _round_up(n, m):
    return ((n + m - 1) // m) * m


def _gru_kernel(x_ref, h0_ref, w_ih_ref, w_hh_ref, b_ref, b_hn_ref,
                w_lin_ref, b_lin_ref, out_ref, gi_scratch, *,
                seq_len, batch_p, unroll):
    """Single-shot GRU forward.

    Shapes (padded):
      x_ref:     (S*Bp, I)   bf16      h0_ref:    (Bp, Hp)   f32
      w_ih_ref:  (I, 3*Hp)   bf16      w_hh_ref:  (Hp, 3*Hp) bf16
      b_ref:     (1, 3*Hp)   f32       b_hn_ref:  (1, Hp)    f32
      w_lin_ref: (Hp, Op)    bf16      b_lin_ref: (1, Op)    f32
      out_ref:   (Bp, Op)    f32       gi_scratch:(S, Bp, 3*Hp) f32
    """
    Hp = h0_ref.shape[1]
    Bp = batch_p

    # (1) Input projection for all timesteps in one MXU matmul (bf16 x bf16 ->
    #     f32 accumulate), biases folded in.  Stored per-step into a 3-D
    #     scratch so the recurrence indexes the leading axis only.
    gi = (jnp.dot(x_ref[...], w_ih_ref[...],
                  preferred_element_type=jnp.float32) + b_ref[...])
    for t in range(seq_len):                       # static, sublane-aligned slices
        gi_scratch[t] = gi[t * Bp:(t + 1) * Bp, :]

    # (2) Hoist only the small loop-invariant value (1 vreg).  W_hh stays
    #     behind its ref and is re-read inside `step` to avoid pinning it in
    #     vregs across the unrolled recurrence.
    b_hn_b = jnp.broadcast_to(b_hn_ref[...], (Bp, Hp))

    # (3) Sequential recurrence: only h @ W_hh + gate elementwise per step.
    def step(t, h):
        g_i = gi_scratch[t]                                            # (Bp, 3*Hp)
        g_h = jnp.dot(h.astype(w_hh_ref.dtype), w_hh_ref[...],
                      preferred_element_type=jnp.float32)              # (Bp, 3*Hp)
        # Fused r/z gates: single tanh-form sigmoid over the contiguous first
        # two lane-aligned gate blocks (one EUP push, no divide); slices stay
        # on 128-lane boundaries.
        rz = 0.5 * jnp.tanh(0.5 * (g_i[:, :2 * Hp] + g_h[:, :2 * Hp])) + 0.5
        r = rz[:, :Hp]
        z = rz[:, Hp:]
        # PyTorch GRU: n = tanh(gi_n + r * (gh_n + b_hn))
        n = jnp.tanh(g_i[:, 2 * Hp:] + r * (g_h[:, 2 * Hp:] + b_hn_b))
        return (1.0 - z) * n + z * h

    h_final = jax.lax.fori_loop(0, seq_len, step, h0_ref[...], unroll=unroll)

    # (4) Fused Linear head; (Bp, Op) output is sublane/lane aligned.
    out_ref[...] = (jnp.dot(h_final.astype(w_lin_ref.dtype), w_lin_ref[...],
                            preferred_element_type=jnp.float32)
                    + b_lin_ref[...])


def gru_forward(x, h0, w_ih, w_hh, b_ih, b_hh, w_lin, b_lin):
    """x: (S,B,I); h0: (1,B,H); PyTorch-shaped weights.
    Returns (B, output_size) f32 = Linear(GRU(x, h0) final hidden state)."""
    S, B, I = x.shape
    H = h0.shape[2]
    O = w_lin.shape[0]

    Bp = _round_up(B, 8)        # sublane alignment
    Hp = _round_up(H, 128)      # lane alignment per gate block
    Op = _round_up(O, 128)      # lane-dense output store

    f32, bf16 = jnp.float32, jnp.bfloat16

    # --- wrapper-side layout prep (padding + transposes, done once) ---------
    x_p = jnp.zeros((S, Bp, I), f32).at[:, :B, :].set(x.astype(f32))
    x_flat = x_p.reshape(S * Bp, I).astype(bf16)                      # (S*Bp, I)

    h0_p = jnp.zeros((Bp, Hp), f32).at[:B, :H].set(h0[0].astype(f32))

    def pad_gate_cols(w_t):     # (K, 3H) -> (K, 3Hp); gate g at cols [g*Hp, g*Hp+H)
        out = jnp.zeros((w_t.shape[0], 3 * Hp), f32)
        for g in range(3):
            out = out.at[:, g * Hp:g * Hp + H].set(w_t[:, g * H:(g + 1) * H])
        return out

    def pad_gate_bias(b):       # (3H,) -> (1, 3Hp)
        out = jnp.zeros((1, 3 * Hp), f32)
        for g in range(3):
            out = out.at[0, g * Hp:g * Hp + H].set(b[g * H:(g + 1) * H])
        return out

    w_ih_p = pad_gate_cols(jnp.asarray(w_ih, f32).T).astype(bf16)     # (I, 3Hp)
    w_hh_p = jnp.zeros((Hp, 3 * Hp), f32).at[:H, :].set(
        pad_gate_cols(jnp.asarray(w_hh, f32).T)).astype(bf16)         # (Hp, 3Hp)

    # Fold b_ih (all gates) + b_hh (r,z gates only) into the precomputed input
    # projection; b_hh_n must stay separate (n = tanh(gi_n + r*(gh_n + b_hn))).
    b_hh_f = jnp.asarray(b_hh, f32)
    b_full = jnp.asarray(b_ih, f32) + jnp.concatenate(
        [b_hh_f[:2 * H], jnp.zeros((H,), f32)])
    b_comb = pad_gate_bias(b_full)                                    # (1, 3Hp)
    b_hn = jnp.zeros((1, Hp), f32).at[0, :H].set(b_hh_f[2 * H:])      # (1, Hp)

    w_lin_p = jnp.zeros((Hp, Op), f32).at[:H, :O].set(
        jnp.asarray(w_lin, f32).T).astype(bf16)
    b_lin_p = jnp.zeros((1, Op), f32).at[0, :O].set(jnp.asarray(b_lin, f32))

    # --- cost hint for the XLA scheduler ------------------------------------
    flops = int(2 * S * Bp * I * 3 * Hp          # input projection
                + S * 2 * Bp * Hp * 3 * Hp       # recurrent matmuls
                + 2 * Bp * Hp * Op               # linear head
                + 10 * S * Bp * Hp)              # gate elementwise (approx)
    transcendentals = int(2 * S * Bp * Hp)       # fused rz tanh + n tanh
    bytes_accessed = int(
        2 * (x_flat.size + w_ih_p.size + w_hh_p.size + w_lin_p.size)
        + 4 * (h0_p.size + b_comb.size + b_hn.size + b_lin_p.size + Bp * Op))

    # VMEM budget derived from actual residents (inputs + gi scratch) with
    # headroom; never below 32 MiB.  (v7x physical VMEM is 64 MiB -- for large
    # S chunk the time axis instead of raising this further, see TODO above.)
    scratch_bytes = S * Bp * 3 * Hp * 4
    vmem_limit = max(32 * 1024 * 1024, int(1.5 * (bytes_accessed + scratch_bytes)))

    vmem_spec = pl.BlockSpec(memory_space=pltpu.MemorySpace.VMEM)

    out_p = pl.pallas_call(
        functools.partial(_gru_kernel, seq_len=S, batch_p=Bp,
                          unroll=min(S, 8)),
        out_shape=jax.ShapeDtypeStruct((Bp, Op), f32),
        in_specs=[vmem_spec] * 8,
        out_specs=vmem_spec,
        scratch_shapes=[pltpu.VMEM((S, Bp, 3 * Hp), f32)],
        cost_estimate=pl.CostEstimate(flops=flops,
                                      transcendentals=transcendentals,
                                      bytes_accessed=bytes_accessed),
        compiler_params=pltpu.CompilerParams(vmem_limit_bytes=vmem_limit),
    )(x_flat, h0_p, w_ih_p, w_hh_p, b_comb, b_hn, w_lin_p, b_lin_p)

    return out_p[:B, :O]


def gru_reference(x, h0, w_ih, w_hh, b_ih, b_hh, w_lin, b_lin):
    """Pure-JAX f32 reference mirroring torch.nn.GRU + nn.Linear."""
    H = h0.shape[2]
    h = h0[0]
    for t in range(x.shape[0]):
        gi = x[t] @ w_ih.T + b_ih
        gh = h @ w_hh.T + b_hh
        r = jax.nn.sigmoid(gi[:, :H] + gh[:, :H])
        z = jax.nn.sigmoid(gi[:, H:2 * H] + gh[:, H:2 * H])
        n = jnp.tanh(gi[:, 2 * H:] + r * gh[:, 2 * H:])
        h = (1.0 - z) * n + z * h
    return h @ w_lin.T + b_lin


if __name__ == "__main__":
    seq_len, batch, input_size, hidden_size, output_size = 8, 2, 16, 32, 8

    key = jax.random.PRNGKey(0)
    ks = jax.random.split(key, 8)
    bound = 1.0 / jnp.sqrt(hidden_size)
    u = lambda k, shape: jax.random.uniform(k, shape, jnp.float32, -bound, bound)

    # Deterministic synthetic parameters (PyTorch nn.GRU / nn.Linear shapes).
    w_ih = u(ks[0], (3 * hidden_size, input_size))
    w_hh = u(ks[1], (3 * hidden_size, hidden_size))
    b_ih = u(ks[2], (3 * hidden_size,))
    b_hh = u(ks[3], (3 * hidden_size,))
    w_lin = u(ks[4], (output_size, hidden_size))
    b_lin = u(ks[5], (output_size,))

    x = jax.random.normal(ks[6], (seq_len, batch, input_size), jnp.float32)
    h0 = jax.random.normal(ks[7], (1, batch, hidden_size), jnp.float32)

    gru_fn = jax.jit(gru_forward)
    out = gru_fn(x, h0, w_ih, w_hh, b_ih, b_hh, w_lin, b_lin)
    out = jax.block_until_ready(out)

    ref = gru_reference(x, h0, w_ih, w_hh, b_ih, b_hh, w_lin, b_lin)
    assert out.shape == (batch, output_size)
    # Tolerance sized for bf16 MXU inputs (weights/x stored bf16, f32 accumulate;
    # DEFAULT TPU matmul precision rounds f32 operands to bf16 anyway).
    assert jnp.allclose(out, ref, atol=5e-3, rtol=5e-3), float(
        jnp.max(jnp.abs(out - ref)))

    print("KERNEL_OK")
</pallas_src>

<mosaic_0001>
module attributes {stable_mosaic.version = 11 : i64} {
  func.func @_gru_kernel(%arg0: memref<64x16xbf16, #tpu.memory_space<vmem>>, %arg1: memref<8x128xf32, #tpu.memory_space<vmem>>, %arg2: memref<16x384xbf16, #tpu.memory_space<vmem>>, %arg3: memref<128x384xbf16, #tpu.memory_space<vmem>>, %arg4: memref<1x384xf32, #tpu.memory_space<vmem>>, %arg5: memref<1x128xf32, #tpu.memory_space<vmem>>, %arg6: memref<128x128xbf16, #tpu.memory_space<vmem>>, %arg7: memref<1x128xf32, #tpu.memory_space<vmem>>, %arg8: memref<8x128xf32, #tpu.memory_space<vmem>>, %arg9: memref<8x8x384xf32, #tpu.memory_space<vmem>>) attributes {dimension_semantics = [], scalar_prefetch = 0 : i64, scratch_operands = 1 : i64, tpu.core_type = #tpu.core_type<tc>} {
    %c0 = arith.constant 0 : index
    %c0_0 = arith.constant 0 : index
    %0 = vector.load %arg0[%c0, %c0_0] : memref<64x16xbf16, #tpu.memory_space<vmem>>, vector<64x16xbf16>
    %c0_1 = arith.constant 0 : index
    %c0_2 = arith.constant 0 : index
    %1 = vector.load %arg2[%c0_1, %c0_2] : memref<16x384xbf16, #tpu.memory_space<vmem>>, vector<16x384xbf16>
    %cst = arith.constant dense<0.000000e+00> : vector<64x384xf32>
    %2 = tpu.matmul %0, %1, %cst {dimension_numbers = #tpu.dot_dimension_numbers<[1], [0], [0], [1], [0, 0, 1, 1], [], []>} : vector<64x16xbf16>, vector<16x384xbf16>, vector<64x384xf32> -> vector<64x384xf32>
    %c0_3 = arith.constant 0 : index
    %c0_4 = arith.constant 0 : index
    %3 = vector.load %arg4[%c0_3, %c0_4] : memref<1x384xf32, #tpu.memory_space<vmem>>, vector<1x384xf32>
    %4 = vector.broadcast %3 : vector<1x384xf32> to vector<64x384xf32>
    %5 = arith.addf %2, %4 : vector<64x384xf32>
    %6 = vector.extract_strided_slice %5 {offsets = [0, 0], sizes = [8, 384], strides = [1, 1]} : vector<64x384xf32> to vector<8x384xf32>
    %c0_5 = arith.constant 0 : index
    %c0_6 = arith.constant 0 : index
    %c0_7 = arith.constant 0 : index
    %7 = vector.load %arg9[%c0_5, %c0_6, %c0_7] : memref<8x8x384xf32, #tpu.memory_space<vmem>>, vector<1x8x384xf32>
    %8 = vector.shape_cast %7 : vector<1x8x384xf32> to vector<8x384xf32>
    %9 = vector.shape_cast %6 : vector<8x384xf32> to vector<1x8x384xf32>
    tpu.vector_store %arg9[%c0_5, %c0_6, %c0_7], %9 {strides = array<i32>} : memref<8x8x384xf32, #tpu.memory_space<vmem>>, vector<1x8x384xf32>,
    %10 = vector.extract_strided_slice %5 {offsets = [8, 0], sizes = [8, 384], strides = [1, 1]} : vector<64x384xf32> to vector<8x384xf32>
    %c1 = arith.constant 1 : index
    %c0_8 = arith.constant 0 : index
    %c0_9 = arith.constant 0 : index
    %11 = vector.load %arg9[%c1, %c0_8, %c0_9] : memref<8x8x384xf32, #tpu.memory_space<vmem>>, vector<1x8x384xf32>
    %12 = vector.shape_cast %11 : vector<1x8x384xf32> to vector<8x384xf32>
    %13 = vector.shape_cast %10 : vector<8x384xf32> to vector<1x8x384xf32>
    tpu.vector_store %arg9[%c1, %c0_8, %c0_9], %13 {strides = array<i32>} : memref<8x8x384xf32, #tpu.memory_space<vmem>>, vector<1x8x384xf32>,
    %14 = vector.extract_strided_slice %5 {offsets = [16, 0], sizes = [8, 384], strides = [1, 1]} : vector<64x384xf32> to vector<8x384xf32>
    %c2 = arith.constant 2 : index
    %c0_10 = arith.constant 0 : index
    %c0_11 = arith.constant 0 : index
    %15 = vector.load %arg9[%c2, %c0_10, %c0_11] : memref<8x8x384xf32, #tpu.memory_space<vmem>>, vector<1x8x384xf32>
    %16 = vector.shape_cast %15 : vector<1x8x384xf32> to vector<8x384xf32>
    %17 = vector.shape_cast %14 : vector<8x384xf32> to vector<1x8x384xf32>
    tpu.vector_store %arg9[%c2, %c0_10, %c0_11], %17 {strides = array<i32>} : memref<8x8x384xf32, #tpu.memory_space<vmem>>, vector<1x8x384xf32>,
    %18 = vector.extract_strided_slice %5 {offsets = [24, 0], sizes = [8, 384], strides = [1, 1]} : vector<64x384xf32> to vector<8x384xf32>
    %c3 = arith.constant 3 : index
    %c0_12 = arith.constant 0 : index
    %c0_13 = arith.constant 0 : index
    %19 = vector.load %arg9[%c3, %c0_12, %c0_13] : memref<8x8x384xf32, #tpu.memory_space<vmem>>, vector<1x8x384xf32>
    %20 = vector.shape_cast %19 : vector<1x8x384xf32> to vector<8x384xf32>
    %21 = vector.shape_cast %18 : vector<8x384xf32> to vector<1x8x384xf32>
    tpu.vector_store %arg9[%c3, %c0_12, %c0_13], %21 {strides = array<i32>} : memref<8x8x384xf32, #tpu.memory_space<vmem>>, vector<1x8x384xf32>,
    %22 = vector.extract_strided_slice %5 {offsets = [32, 0], sizes = [8, 384], strides = [1, 1]} : vector<64x384xf32> to vector<8x384xf32>
    %c4 = arith.constant 4 : index
    %c0_14 = arith.constant 0 : index
    %c0_15 = arith.constant 0 : index
    %23 = vector.load %arg9[%c4, %c0_14, %c0_15] : memref<8x8x384xf32, #tpu.memory_space<vmem>>, vector<1x8x384xf32>
    %24 = vector.shape_cast %23 : vector<1x8x384xf32> to vector<8x384xf32>
    %25 = vector.shape_cast %22 : vector<8x384xf32> to vector<1x8x384xf32>
    tpu.vector_store %arg9[%c4, %c0_14, %c0_15], %25 {strides = array<i32>} : memref<8x8x384xf32, #tpu.memory_space<vmem>>, vector<1x8x384xf32>,
    %26 = vector.extract_strided_slice %5 {offsets = [40, 0], sizes = [8, 384], strides = [1, 1]} : vector<64x384xf32> to vector<8x384xf32>
    %c5 = arith.constant 5 : index
    %c0_16 = arith.constant 0 : index
    %c0_17 = arith.constant 0 : index
    %27 = vector.load %arg9[%c5, %c0_16, %c0_17] : memref<8x8x384xf32, #tpu.memory_space<vmem>>, vector<1x8x384xf32>
    %28 = vector.shape_cast %27 : vector<1x8x384xf32> to vector<8x384xf32>
    %29 = vector.shape_cast %26 : vector<8x384xf32> to vector<1x8x384xf32>
    tpu.vector_store %arg9[%c5, %c0_16, %c0_17], %29 {strides = array<i32>} : memref<8x8x384xf32, #tpu.memory_space<vmem>>, vector<1x8x384xf32>,
    %30 = vector.extract_strided_slice %5 {offsets = [48, 0], sizes = [8, 384], strides = [1, 1]} : vector<64x384xf32> to vector<8x384xf32>
    %c6 = arith.constant 6 : index
    %c0_18 = arith.constant 0 : index
    %c0_19 = arith.constant 0 : index
    %31 = vector.load %arg9[%c6, %c0_18, %c0_19] : memref<8x8x384xf32, #tpu.memory_space<vmem>>, vector<1x8x384xf32>
    %32 = vector.shape_cast %31 : vector<1x8x384xf32> to vector<8x384xf32>
    %33 = vector.shape_cast %30 : vector<8x384xf32> to vector<1x8x384xf32>
    tpu.vector_store %arg9[%c6, %c0_18, %c0_19], %33 {strides = array<i32>} : memref<8x8x384xf32, #tpu.memory_space<vmem>>, vector<1x8x384xf32>,
    %34 = vector.extract_strided_slice %5 {offsets = [56, 0], sizes = [8, 384], strides = [1, 1]} : vector<64x384xf32> to vector<8x384xf32>
    %c7 = arith.constant 7 : index
    %c0_20 = arith.constant 0 : index
    %c0_21 = arith.constant 0 : index
    %35 = vector.load %arg9[%c7, %c0_20, %c0_21] : memref<8x8x384xf32, #tpu.memory_space<vmem>>, vector<1x8x384xf32>
    %36 = vector.shape_cast %35 : vector<1x8x384xf32> to vector<8x384xf32>
    %37 = vector.shape_cast %34 : vector<8x384xf32> to vector<1x8x384xf32>
    tpu.vector_store %arg9[%c7, %c0_20, %c0_21], %37 {strides = array<i32>} : memref<8x8x384xf32, #tpu.memory_space<vmem>>, vector<1x8x384xf32>,
    %c0_22 = arith.constant 0 : index
    %c0_23 = arith.constant 0 : index
    %38 = vector.load %arg5[%c0_22, %c0_23] : memref<1x128xf32, #tpu.memory_space<vmem>>, vector<1x128xf32>
    %39 = vector.shape_cast %38 : vector<1x128xf32> to vector<1x128xf32>
    %40 = vector.broadcast %39 : vector<1x128xf32> to vector<8x128xf32>
    %c0_24 = arith.constant 0 : index
    %c0_25 = arith.constant 0 : index
    %41 = vector.load %arg1[%c0_24, %c0_25] : memref<8x128xf32, #tpu.memory_space<vmem>>, vector<8x128xf32>
    %c0_i32 = arith.constant 0 : i32
    %42 = arith.index_cast %c0_i32 : i32 to index
    %c0_26 = arith.constant 0 : index
    %c0_27 = arith.constant 0 : index
    %43 = vector.load %arg9[%42, %c0_26, %c0_27] : memref<8x8x384xf32, #tpu.memory_space<vmem>>, vector<1x8x384xf32>
    %44 = vector.shape_cast %43 : vector<1x8x384xf32> to vector<8x384xf32>
    %45 = arith.truncf %41 : vector<8x128xf32> to vector<8x128xbf16>
    %c0_28 = arith.constant 0 : index
    %c0_29 = arith.constant 0 : index
    %46 = vector.load %arg3[%c0_28, %c0_29] : memref<128x384xbf16, #tpu.memory_space<vmem>>, vector<128x384xbf16>
    %cst_30 = arith.constant dense<0.000000e+00> : vector<8x384xf32>
    %47 = tpu.matmul %45, %46, %cst_30 {dimension_numbers = #tpu.dot_dimension_numbers<[1], [0], [0], [1], [0, 0, 1, 1], [], []>} : vector<8x128xbf16>, vector<128x384xbf16>, vector<8x384xf32> -> vector<8x384xf32>
    %48 = vector.extract_strided_slice %44 {offsets = [0, 0], sizes = [8, 256], strides = [1, 1]} : vector<8x384xf32> to vector<8x256xf32>
    %49 = vector.extract_strided_slice %47 {offsets = [0, 0], sizes = [8, 256], strides = [1, 1]} : vector<8x384xf32> to vector<8x256xf32>
    %50 = arith.addf %48, %49 : vector<8x256xf32>
    %cst_31 = arith.constant 5.000000e-01 : f32
    %51 = vector.broadcast %cst_31 : f32 to vector<8x256xf32>
    %52 = arith.mulf %51, %50 : vector<8x256xf32>
    %53 = math.tanh %52 : vector<8x256xf32>
    %cst_32 = arith.constant 5.000000e-01 : f32
    %54 = vector.broadcast %cst_32 : f32 to vector<8x256xf32>
    %55 = arith.mulf %54, %53 : vector<8x256xf32>
    %cst_33 = arith.constant 5.000000e-01 : f32
    %56 = vector.broadcast %cst_33 : f32 to vector<8x256xf32>
    %57 = arith.addf %55, %56 : vector<8x256xf32>
    %58 = vector.extract_strided_slice %57 {offsets = [0, 0], sizes = [8, 128], strides = [1, 1]} : vector<8x256xf32> to vector<8x128xf32>
    %59 = vector.extract_strided_slice %57 {offsets = [0, 128], sizes = [8, 128], strides = [1, 1]} : vector<8x256xf32> to vector<8x128xf32>
    %60 = vector.extract_strided_slice %44 {offsets = [0, 256], sizes = [8, 128], strides = [1, 1]} : vector<8x384xf32> to vector<8x128xf32>
    %61 = vector.extract_strided_slice %47 {offsets = [0, 256], sizes = [8, 128], strides = [1, 1]} : vector<8x384xf32> to vector<8x128xf32>
    %62 = arith.addf %61, %40 : vector<8x128xf32>
    %63 = arith.mulf %58, %62 : vector<8x128xf32>
    %64 = arith.addf %60, %63 : vector<8x128xf32>
    %65 = math.tanh %64 : vector<8x128xf32>
    %cst_34 = arith.constant 1.000000e+00 : f32
    %66 = vector.broadcast %cst_34 : f32 to vector<8x128xf32>
    %67 = arith.subf %66, %59 : vector<8x128xf32>
    %68 = arith.mulf %67, %65 : vector<8x128xf32>
    %69 = arith.mulf %59, %41 : vector<8x128xf32>
    %70 = arith.addf %68, %69 : vector<8x128xf32>
    %c1_i32 = arith.constant 1 : i32
    %71 = arith.index_cast %c1_i32 : i32 to index
    %c0_35 = arith.constant 0 : index
    %c0_36 = arith.constant 0 : index
    %72 = vector.load %arg9[%71, %c0_35, %c0_36] : memref<8x8x384xf32, #tpu.memory_space<vmem>>, vector<1x8x384xf32>
    %73 = vector.shape_cast %72 : vector<1x8x384xf32> to vector<8x384xf32>
    %74 = arith.truncf %70 : vector<8x128xf32> to vector<8x128xbf16>
    %c0_37 = arith.constant 0 : index
    %c0_38 = arith.constant 0 : index
    %75 = vector.load %arg3[%c0_37, %c0_38] : memref<128x384xbf16, #tpu.memory_space<vmem>>, vector<128x384xbf16>
    %cst_39 = arith.constant dense<0.000000e+00> : vector<8x384xf32>
    %76 = tpu.matmul %74, %75, %cst_39 {dimension_numbers = #tpu.dot_dimension_numbers<[1], [0], [0], [1], [0, 0, 1, 1], [], []>} : vector<8x128xbf16>, vector<128x384xbf16>, vector<8x384xf32> -> vector<8x384xf32>
    %77 = vector.extract_strided_slice %73 {offsets = [0, 0], sizes = [8, 256], strides = [1, 1]} : vector<8x384xf32> to vector<8x256xf32>
    %78 = vector.extract_strided_slice %76 {offsets = [0, 0], sizes = [8, 256], strides = [1, 1]} : vector<8x384xf32> to vector<8x256xf32>
    %79 = arith.addf %77, %78 : vector<8x256xf32>
    %cst_40 = arith.constant 5.000000e-01 : f32
    %80 = vector.broadcast %cst_40 : f32 to vector<8x256xf32>
    %81 = arith.mulf %80, %79 : vector<8x256xf32>
    %82 = math.tanh %81 : vector<8x256xf32>
    %cst_41 = arith.constant 5.000000e-01 : f32
    %83 = vector.broadcast %cst_41 : f32 to vector<8x256xf32>
    %84 = arith.mulf %83, %82 : vector<8x256xf32>
    %cst_42 = arith.constant 5.000000e-01 : f32
    %85 = vector.broadcast %cst_42 : f32 to vector<8x256xf32>
    %86 = arith.addf %84, %85 : vector<8x256xf32>
    %87 = vector.extract_strided_slice %86 {offsets = [0, 0], sizes = [8, 128], strides = [1, 1]} : vector<8x256xf32> to vector<8x128xf32>
    %88 = vector.extract_strided_slice %86 {offsets = [0, 128], sizes = [8, 128], strides = [1, 1]} : vector<8x256xf32> to vector<8x128xf32>
    %89 = vector.extract_strided_slice %73 {offsets = [0, 256], sizes = [8, 128], strides = [1, 1]} : vector<8x384xf32> to vector<8x128xf32>
    %90 = vector.extract_strided_slice %76 {offsets = [0, 256], sizes = [8, 128], strides = [1, 1]} : vector<8x384xf32> to vector<8x128xf32>
    %91 = arith.addf %90, %40 : vector<8x128xf32>
    %92 = arith.mulf %87, %91 : vector<8x128xf32>
    %93 = arith.addf %89, %92 : vector<8x128xf32>
    %94 = math.tanh %93 : vector<8x128xf32>
    %cst_43 = arith.constant 1.000000e+00 : f32
    %95 = vector.broadcast %cst_43 : f32 to vector<8x128xf32>
    %96 = arith.subf %95, %88 : vector<8x128xf32>
    %97 = arith.mulf %96, %94 : vector<8x128xf32>
    %98 = arith.mulf %88, %70 : vector<8x128xf32>
    %99 = arith.addf %97, %98 : vector<8x128xf32>
    %c2_i32 = arith.constant 2 : i32
    %100 = arith.index_cast %c2_i32 : i32 to index
    %c0_44 = arith.constant 0 : index
    %c0_45 = arith.constant 0 : index
    %101 = vector.load %arg9[%100, %c0_44, %c0_45] : memref<8x8x384xf32, #tpu.memory_space<vmem>>, vector<1x8x384xf32>
    %102 = vector.shape_cast %101 : vector<1x8x384xf32> to vector<8x384xf32>
    %103 = arith.truncf %99 : vector<8x128xf32> to vector<8x128xbf16>
    %c0_46 = arith.constant 0 : index
    %c0_47 = arith.constant 0 : index
    %104 = vector.load %arg3[%c0_46, %c0_47] : memref<128x384xbf16, #tpu.memory_space<vmem>>, vector<128x384xbf16>
    %cst_48 = arith.constant dense<0.000000e+00> : vector<8x384xf32>
    %105 = tpu.matmul %103, %104, %cst_48 {dimension_numbers = #tpu.dot_dimension_numbers<[1], [0], [0], [1], [0, 0, 1, 1], [], []>} : vector<8x128xbf16>, vector<128x384xbf16>, vector<8x384xf32> -> vector<8x384xf32>
    %106 = vector.extract_strided_slice %102 {offsets = [0, 0], sizes = [8, 256], strides = [1, 1]} : vector<8x384xf32> to vector<8x256xf32>
    %107 = vector.extract_strided_slice %105 {offsets = [0, 0], sizes = [8, 256], strides = [1, 1]} : vector<8x384xf32> to vector<8x256xf32>
    %108 = arith.addf %106, %107 : vector<8x256xf32>
    %cst_49 = arith.constant 5.000000e-01 : f32
    %109 = vector.broadcast %cst_49 : f32 to vector<8x256xf32>
    %110 = arith.mulf %109, %108 : vector<8x256xf32>
    %111 = math.tanh %110 : vector<8x256xf32>
    %cst_50 = arith.constant 5.000000e-01 : f32
    %112 = vector.broadcast %cst_50 : f32 to vector<8x256xf32>
    %113 = arith.mulf %112, %111 : vector<8x256xf32>
    %cst_51 = arith.constant 5.000000e-01 : f32
    %114 = vector.broadcast %cst_51 : f32 to vector<8x256xf32>
    %115 = arith.addf %113, %114 : vector<8x256xf32>
    %116 = vector.extract_strided_slice %115 {offsets = [0, 0], sizes = [8, 128], strides = [1, 1]} : vector<8x256xf32> to vector<8x128xf32>
    %117 = vector.extract_strided_slice %115 {offsets = [0, 128], sizes = [8, 128], strides = [1, 1]} : vector<8x256xf32> to vector<8x128xf32>
    %118 = vector.extract_strided_slice %102 {offsets = [0, 256], sizes = [8, 128], strides = [1, 1]} : vector<8x384xf32> to vector<8x128xf32>
    %119 = vector.extract_strided_slice %105 {offsets = [0, 256], sizes = [8, 128], strides = [1, 1]} : vector<8x384xf32> to vector<8x128xf32>
    %120 = arith.addf %119, %40 : vector<8x128xf32>
    %121 = arith.mulf %116, %120 : vector<8x128xf32>
    %122 = arith.addf %118, %121 : vector<8x128xf32>
    %123 = math.tanh %122 : vector<8x128xf32>
    %cst_52 = arith.constant 1.000000e+00 : f32
    %124 = vector.broadcast %cst_52 : f32 to vector<8x128xf32>
    %125 = arith.subf %124, %117 : vector<8x128xf32>
    %126 = arith.mulf %125, %123 : vector<8x128xf32>
    %127 = arith.mulf %117, %99 : vector<8x128xf32>
    %128 = arith.addf %126, %127 : vector<8x128xf32>
    %c3_i32 = arith.constant 3 : i32
    %129 = arith.index_cast %c3_i32 : i32 to index
    %c0_53 = arith.constant 0 : index
    %c0_54 = arith.constant 0 : index
    %130 = vector.load %arg9[%129, %c0_53, %c0_54] : memref<8x8x384xf32, #tpu.memory_space<vmem>>, vector<1x8x384xf32>
    %131 = vector.shape_cast %130 : vector<1x8x384xf32> to vector<8x384xf32>
    %132 = arith.truncf %128 : vector<8x128xf32> to vector<8x128xbf16>
    %c0_55 = arith.constant 0 : index
    %c0_56 = arith.constant 0 : index
    %133 = vector.load %arg3[%c0_55, %c0_56] : memref<128x384xbf16, #tpu.memory_space<vmem>>, vector<128x384xbf16>
    %cst_57 = arith.constant dense<0.000000e+00> : vector<8x384xf32>
    %134 = tpu.matmul %132, %133, %cst_57 {dimension_numbers = #tpu.dot_dimension_numbers<[1], [0], [0], [1], [0, 0, 1, 1], [], []>} : vector<8x128xbf16>, vector<128x384xbf16>, vector<8x384xf32> -> vector<8x384xf32>
    %135 = vector.extract_strided_slice %131 {offsets = [0, 0], sizes = [8, 256], strides = [1, 1]} : vector<8x384xf32> to vector<8x256xf32>
    %136 = vector.extract_strided_slice %134 {offsets = [0, 0], sizes = [8, 256], strides = [1, 1]} : vector<8x384xf32> to vector<8x256xf32>
    %137 = arith.addf %135, %136 : vector<8x256xf32>
    %cst_58 = arith.constant 5.000000e-01 : f32
    %138 = vector.broadcast %cst_58 : f32 to vector<8x256xf32>
    %139 = arith.mulf %138, %137 : vector<8x256xf32>
    %140 = math.tanh %139 : vector<8x256xf32>
    %cst_59 = arith.constant 5.000000e-01 : f32
    %141 = vector.broadcast %cst_59 : f32 to vector<8x256xf32>
    %142 = arith.mulf %141, %140 : vector<8x256xf32>
    %cst_60 = arith.constant 5.000000e-01 : f32
    %143 = vector.broadcast %cst_60 : f32 to vector<8x256xf32>
    %144 = arith.addf %142, %143 : vector<8x256xf32>
    %145 = vector.extract_strided_slice %144 {offsets = [0, 0], sizes = [8, 128], strides = [1, 1]} : vector<8x256xf32> to vector<8x128xf32>
    %146 = vector.extract_strided_slice %144 {offsets = [0, 128], sizes = [8, 128], strides = [1, 1]} : vector<8x256xf32> to vector<8x128xf32>
    %147 = vector.extract_strided_slice %131 {offsets = [0, 256], sizes = [8, 128], strides = [1, 1]} : vector<8x384xf32> to vector<8x128xf32>
    %148 = vector.extract_strided_slice %134 {offsets = [0, 256], sizes = [8, 128], strides = [1, 1]} : vector<8x384xf32> to vector<8x128xf32>
    %149 = arith.addf %148, %40 : vector<8x128xf32>
    %150 = arith.mulf %145, %149 : vector<8x128xf32>
    %151 = arith.addf %147, %150 : vector<8x128xf32>
    %152 = math.tanh %151 : vector<8x128xf32>
    %cst_61 = arith.constant 1.000000e+00 : f32
    %153 = vector.broadcast %cst_61 : f32 to vector<8x128xf32>
    %154 = arith.subf %153, %146 : vector<8x128xf32>
    %155 = arith.mulf %154, %152 : vector<8x128xf32>
    %156 = arith.mulf %146, %128 : vector<8x128xf32>
    %157 = arith.addf %155, %156 : vector<8x128xf32>
    %c4_i32 = arith.constant 4 : i32
    %158 = arith.index_cast %c4_i32 : i32 to index
    %c0_62 = arith.constant 0 : index
    %c0_63 = arith.constant 0 : index
    %159 = vector.load %arg9[%158, %c0_62, %c0_63] : memref<8x8x384xf32, #tpu.memory_space<vmem>>, vector<1x8x384xf32>
    %160 = vector.shape_cast %159 : vector<1x8x384xf32> to vector<8x384xf32>
    %161 = arith.truncf %157 : vector<8x128xf32> to vector<8x128xbf16>
    %c0_64 = arith.constant 0 : index
    %c0_65 = arith.constant 0 : index
    %162 = vector.load %arg3[%c0_64, %c0_65] : memref<128x384xbf16, #tpu.memory_space<vmem>>, vector<128x384xbf16>
    %cst_66 = arith.constant dense<0.000000e+00> : vector<8x384xf32>
    %163 = tpu.matmul %161, %162, %cst_66 {dimension_numbers = #tpu.dot_dimension_numbers<[1], [0], [0], [1], [0, 0, 1, 1], [], []>} : vector<8x128xbf16>, vector<128x384xbf16>, vector<8x384xf32> -> vector<8x384xf32>
    %164 = vector.extract_strided_slice %160 {offsets = [0, 0], sizes = [8, 256], strides = [1, 1]} : vector<8x384xf32> to vector<8x256xf32>
    %165 = vector.extract_strided_slice %163 {offsets = [0, 0], sizes = [8, 256], strides = [1, 1]} : vector<8x384xf32> to vector<8x256xf32>
    %166 = arith.addf %164, %165 : vector<8x256xf32>
    %cst_67 = arith.constant 5.000000e-01 : f32
    %167 = vector.broadcast %cst_67 : f32 to vector<8x256xf32>
    %168 = arith.mulf %167, %166 : vector<8x256xf32>
    %169 = math.tanh %168 : vector<8x256xf32>
    %cst_68 = arith.constant 5.000000e-01 : f32
    %170 = vector.broadcast %cst_68 : f32 to vector<8x256xf32>
    %171 = arith.mulf %170, %169 : vector<8x256xf32>
    %cst_69 = arith.constant 5.000000e-01 : f32
    %172 = vector.broadcast %cst_69 : f32 to vector<8x256xf32>
    %173 = arith.addf %171, %172 : vector<8x256xf32>
    %174 = vector.extract_strided_slice %173 {offsets = [0, 0], sizes = [8, 128], strides = [1, 1]} : vector<8x256xf32> to vector<8x128xf32>
    %175 = vector.extract_strided_slice %173 {offsets = [0, 128], sizes = [8, 128], strides = [1, 1]} : vector<8x256xf32> to vector<8x128xf32>
    %176 = vector.extract_strided_slice %160 {offsets = [0, 256], sizes = [8, 128], strides = [1, 1]} : vector<8x384xf32> to vector<8x128xf32>
    %177 = vector.extract_strided_slice %163 {offsets = [0, 256], sizes = [8, 128], strides = [1, 1]} : vector<8x384xf32> to vector<8x128xf32>
    %178 = arith.addf %177, %40 : vector<8x128xf32>
    %179 = arith.mulf %174, %178 : vector<8x128xf32>
    %180 = arith.addf %176, %179 : vector<8x128xf32>
    %181 = math.tanh %180 : vector<8x128xf32>
    %cst_70 = arith.constant 1.000000e+00 : f32
    %182 = vector.broadcast %cst_70 : f32 to vector<8x128xf32>
    %183 = arith.subf %182, %175 : vector<8x128xf32>
    %184 = arith.mulf %183, %181 : vector<8x128xf32>
    %185 = arith.mulf %175, %157 : vector<8x128xf32>
    %186 = arith.addf %184, %185 : vector<8x128xf32>
    %c5_i32 = arith.constant 5 : i32
    %187 = arith.index_cast %c5_i32 : i32 to index
    %c0_71 = arith.constant 0 : index
    %c0_72 = arith.constant 0 : index
    %188 = vector.load %arg9[%187, %c0_71, %c0_72] : memref<8x8x384xf32, #tpu.memory_space<vmem>>, vector<1x8x384xf32>
    %189 = vector.shape_cast %188 : vector<1x8x384xf32> to vector<8x384xf32>
    %190 = arith.truncf %186 : vector<8x128xf32> to vector<8x128xbf16>
    %c0_73 = arith.constant 0 : index
    %c0_74 = arith.constant 0 : index
    %191 = vector.load %arg3[%c0_73, %c0_74] : memref<128x384xbf16, #tpu.memory_space<vmem>>, vector<128x384xbf16>
    %cst_75 = arith.constant dense<0.000000e+00> : vector<8x384xf32>
    %192 = tpu.matmul %190, %191, %cst_75 {dimension_numbers = #tpu.dot_dimension_numbers<[1], [0], [0], [1], [0, 0, 1, 1], [], []>} : vector<8x128xbf16>, vector<128x384xbf16>, vector<8x384xf32> -> vector<8x384xf32>
    %193 = vector.extract_strided_slice %189 {offsets = [0, 0], sizes = [8, 256], strides = [1, 1]} : vector<8x384xf32> to vector<8x256xf32>
    %194 = vector.extract_strided_slice %192 {offsets = [0, 0], sizes = [8, 256], strides = [1, 1]} : vector<8x384xf32> to vector<8x256xf32>
    %195 = arith.addf %193, %194 : vector<8x256xf32>
    %cst_76 = arith.constant 5.000000e-01 : f32
    %196 = vector.broadcast %cst_76 : f32 to vector<8x256xf32>
    %197 = arith.mulf %196, %195 : vector<8x256xf32>
    %198 = math.tanh %197 : vector<8x256xf32>
    %cst_77 = arith.constant 5.000000e-01 : f32
    %199 = vector.broadcast %cst_77 : f32 to vector<8x256xf32>
    %200 = arith.mulf %199, %198 : vector<8x256xf32>
    %cst_78 = arith.constant 5.000000e-01 : f32
    %201 = vector.broadcast %cst_78 : f32 to vector<8x256xf32>
    %202 = arith.addf %200, %201 : vector<8x256xf32>
    %203 = vector.extract_strided_slice %202 {offsets = [0, 0], sizes = [8, 128], strides = [1, 1]} : vector<8x256xf32> to vector<8x128xf32>
    %204 = vector.extract_strided_slice %202 {offsets = [0, 128], sizes = [8, 128], strides = [1, 1]} : vector<8x256xf32> to vector<8x128xf32>
    %205 = vector.extract_strided_slice %189 {offsets = [0, 256], sizes = [8, 128], strides = [1, 1]} : vector<8x384xf32> to vector<8x128xf32>
    %206 = vector.extract_strided_slice %192 {offsets = [0, 256], sizes = [8, 128], strides = [1, 1]} : vector<8x384xf32> to vector<8x128xf32>
    %207 = arith.addf %206, %40 : vector<8x128xf32>
    %208 = arith.mulf %203, %207 : vector<8x128xf32>
    %209 = arith.addf %205, %208 : vector<8x128xf32>
    %210 = math.tanh %209 : vector<8x128xf32>
    %cst_79 = arith.constant 1.000000e+00 : f32
    %211 = vector.broadcast %cst_79 : f32 to vector<8x128xf32>
    %212 = arith.subf %211, %204 : vector<8x128xf32>
    %213 = arith.mulf %212, %210 : vector<8x128xf32>
    %214 = arith.mulf %204, %186 : vector<8x128xf32>
    %215 = arith.addf %213, %214 : vector<8x128xf32>
    %c6_i32 = arith.constant 6 : i32
    %216 = arith.index_cast %c6_i32 : i32 to index
    %c0_80 = arith.constant 0 : index
    %c0_81 = arith.constant 0 : index
    %217 = vector.load %arg9[%216, %c0_80, %c0_81] : memref<8x8x384xf32, #tpu.memory_space<vmem>>, vector<1x8x384xf32>
    %218 = vector.shape_cast %217 : vector<1x8x384xf32> to vector<8x384xf32>
    %219 = arith.truncf %215 : vector<8x128xf32> to vector<8x128xbf16>
    %c0_82 = arith.constant 0 : index
    %c0_83 = arith.constant 0 : index
    %220 = vector.load %arg3[%c0_82, %c0_83] : memref<128x384xbf16, #tpu.memory_space<vmem>>, vector<128x384xbf16>
    %cst_84 = arith.constant dense<0.000000e+00> : vector<8x384xf32>
    %221 = tpu.matmul %219, %220, %cst_84 {dimension_numbers = #tpu.dot_dimension_numbers<[1], [0], [0], [1], [0, 0, 1, 1], [], []>} : vector<8x128xbf16>, vector<128x384xbf16>, vector<8x384xf32> -> vector<8x384xf32>
    %222 = vector.extract_strided_slice %218 {offsets = [0, 0], sizes = [8, 256], strides = [1, 1]} : vector<8x384xf32> to vector<8x256xf32>
    %223 = vector.extract_strided_slice %221 {offsets = [0, 0], sizes = [8, 256], strides = [1, 1]} : vector<8x384xf32> to vector<8x256xf32>
    %224 = arith.addf %222, %223 : vector<8x256xf32>
    %cst_85 = arith.constant 5.000000e-01 : f32
    %225 = vector.broadcast %cst_85 : f32 to vector<8x256xf32>
    %226 = arith.mulf %225, %224 : vector<8x256xf32>
    %227 = math.tanh %226 : vector<8x256xf32>
    %cst_86 = arith.constant 5.000000e-01 : f32
    %228 = vector.broadcast %cst_86 : f32 to vector<8x256xf32>
    %229 = arith.mulf %228, %227 : vector<8x256xf32>
    %cst_87 = arith.constant 5.000000e-01 : f32
    %230 = vector.broadcast %cst_87 : f32 to vector<8x256xf32>
    %231 = arith.addf %229, %230 : vector<8x256xf32>
    %232 = vector.extract_strided_slice %231 {offsets = [0, 0], sizes = [8, 128], strides = [1, 1]} : vector<8x256xf32> to vector<8x128xf32>
    %233 = vector.extract_strided_slice %231 {offsets = [0, 128], sizes = [8, 128], strides = [1, 1]} : vector<8x256xf32> to vector<8x128xf32>
    %234 = vector.extract_strided_slice %218 {offsets = [0, 256], sizes = [8, 128], strides = [1, 1]} : vector<8x384xf32> to vector<8x128xf32>
    %235 = vector.extract_strided_slice %221 {offsets = [0, 256], sizes = [8, 128], strides = [1, 1]} : vector<8x384xf32> to vector<8x128xf32>
    %236 = arith.addf %235, %40 : vector<8x128xf32>
    %237 = arith.mulf %232, %236 : vector<8x128xf32>
    %238 = arith.addf %234, %237 : vector<8x128xf32>
    %239 = math.tanh %238 : vector<8x128xf32>
    %cst_88 = arith.constant 1.000000e+00 : f32
    %240 = vector.broadcast %cst_88 : f32 to vector<8x128xf32>
    %241 = arith.subf %240, %233 : vector<8x128xf32>
    %242 = arith.mulf %241, %239 : vector<8x128xf32>
    %243 = arith.mulf %233, %215 : vector<8x128xf32>
    %244 = arith.addf %242, %243 : vector<8x128xf32>
    %c7_i32 = arith.constant 7 : i32
    %245 = arith.index_cast %c7_i32 : i32 to index
    %c0_89 = arith.constant 0 : index
    %c0_90 = arith.constant 0 : index
    %246 = vector.load %arg9[%245, %c0_89, %c0_90] : memref<8x8x384xf32, #tpu.memory_space<vmem>>, vector<1x8x384xf32>
    %247 = vector.shape_cast %246 : vector<1x8x384xf32> to vector<8x384xf32>
    %248 = arith.truncf %244 : vector<8x128xf32> to vector<8x128xbf16>
    %c0_91 = arith.constant 0 : index
    %c0_92 = arith.constant 0 : index
    %249 = vector.load %arg3[%c0_91, %c0_92] : memref<128x384xbf16, #tpu.memory_space<vmem>>, vector<128x384xbf16>
    %cst_93 = arith.constant dense<0.000000e+00> : vector<8x384xf32>
    %250 = tpu.matmul %248, %249, %cst_93 {dimension_numbers = #tpu.dot_dimension_numbers<[1], [0], [0], [1], [0, 0, 1, 1], [], []>} : vector<8x128xbf16>, vector<128x384xbf16>, vector<8x384xf32> -> vector<8x384xf32>
    %251 = vector.extract_strided_slice %247 {offsets = [0, 0], sizes = [8, 256], strides = [1, 1]} : vector<8x384xf32> to vector<8x256xf32>
    %252 = vector.extract_strided_slice %250 {offsets = [0, 0], sizes = [8, 256], strides = [1, 1]} : vector<8x384xf32> to vector<8x256xf32>
    %253 = arith.addf %251, %252 : vector<8x256xf32>
    %cst_94 = arith.constant 5.000000e-01 : f32
    %254 = vector.broadcast %cst_94 : f32 to vector<8x256xf32>
    %255 = arith.mulf %254, %253 : vector<8x256xf32>
    %256 = math.tanh %255 : vector<8x256xf32>
    %cst_95 = arith.constant 5.000000e-01 : f32
    %257 = vector.broadcast %cst_95 : f32 to vector<8x256xf32>
    %258 = arith.mulf %257, %256 : vector<8x256xf32>
    %cst_96 = arith.constant 5.000000e-01 : f32
    %259 = vector.broadcast %cst_96 : f32 to vector<8x256xf32>
    %260 = arith.addf %258, %259 : vector<8x256xf32>
    %261 = vector.extract_strided_slice %260 {offsets = [0, 0], sizes = [8, 128], strides = [1, 1]} : vector<8x256xf32> to vector<8x128xf32>
    %262 = vector.extract_strided_slice %260 {offsets = [0, 128], sizes = [8, 128], strides = [1, 1]} : vector<8x256xf32> to vector<8x128xf32>
    %263 = vector.extract_strided_slice %247 {offsets = [0, 256], sizes = [8, 128], strides = [1, 1]} : vector<8x384xf32> to vector<8x128xf32>
    %264 = vector.extract_strided_slice %250 {offsets = [0, 256], sizes = [8, 128], strides = [1, 1]} : vector<8x384xf32> to vector<8x128xf32>
    %265 = arith.addf %264, %40 : vector<8x128xf32>
    %266 = arith.mulf %261, %265 : vector<8x128xf32>
    %267 = arith.addf %263, %266 : vector<8x128xf32>
    %268 = math.tanh %267 : vector<8x128xf32>
    %cst_97 = arith.constant 1.000000e+00 : f32
    %269 = vector.broadcast %cst_97 : f32 to vector<8x128xf32>
    %270 = arith.subf %269, %262 : vector<8x128xf32>
    %271 = arith.mulf %270, %268 : vector<8x128xf32>
    %272 = arith.mulf %262, %244 : vector<8x128xf32>
    %273 = arith.addf %271, %272 : vector<8x128xf32>
    %c8_i32 = arith.constant 8 : i32
    %274 = arith.truncf %273 : vector<8x128xf32> to vector<8x128xbf16>
    %c0_98 = arith.constant 0 : index
    %c0_99 = arith.constant 0 : index
    %275 = vector.load %arg6[%c0_98, %c0_99] : memref<128x128xbf16, #tpu.memory_space<vmem>>, vector<128x128xbf16>
    %cst_100 = arith.constant dense<0.000000e+00> : vector<8x128xf32>
    %276 = tpu.matmul %274, %275, %cst_100 {dimension_numbers = #tpu.dot_dimension_numbers<[1], [0], [0], [1], [0, 0, 1, 1], [], []>} : vector<8x128xbf16>, vector<128x128xbf16>, vector<8x128xf32> -> vector<8x128xf32>
    %c0_101 = arith.constant 0 : index
    %c0_102 = arith.constant 0 : index
    %277 = vector.load %arg7[%c0_101, %c0_102] : memref<1x128xf32, #tpu.memory_space<vmem>>, vector<1x128xf32>
    %278 = vector.broadcast %277 : vector<1x128xf32> to vector<8x128xf32>
    %279 = arith.addf %276, %278 : vector<8x128xf32>
    %c0_103 = arith.constant 0 : index
    %c0_104 = arith.constant 0 : index
    %280 = vector.load %arg8[%c0_103, %c0_104] : memref<8x128xf32, #tpu.memory_space<vmem>>, vector<8x128xf32>
    tpu.vector_store %arg8[%c0_103, %c0_104], %279 {strides = array<i32>} : memref<8x128xf32, #tpu.memory_space<vmem>>, vector<8x128xf32>,
    return
  }
}

</mosaic_0001>

<bundles_post_ra>
// kernel: gru_forward.1
= control target key start
LH: loop header
LB: loop body
LE: loop exit
PB: predicated region body
PF: predicated region fallthrough
CT: control target
= control target key end

     0   :  { %vm86_vm0 = vcmask 130048   ;;  %s1836_s2 = inlined_call_operand.vmem [shape: bf16[16,384], index: 2, kind: input, shape index: {}]   ;;  %s1837_s3 = inlined_call_operand.vmem [shape: bf16[128,384], index: 3, kind: input, shape index: {}]   ;;  %s1838_s0 = inlined_call_operand.vmem [shape: bf16[64,16], index: 0, kind: input, shape index: {}]   ;;  %s1839_s1 = inlined_call_operand.vmem [shape: f32[8,128], index: 1, kind: input, shape index: {}]   ;;  %s1840_s5 = inlined_call_operand.vmem [shape: f32[1,128], index: 5, kind: input, shape index: {}]   ;;  %s1841_s4 = inlined_call_operand.vmem [shape: f32[1,384], index: 4, kind: input, shape index: {}]   ;;  %s1842_s7 = inlined_call_operand.vmem [shape: f32[1,128], index: 7, kind: input, shape index: {}]   ;;  %s1843_s6 = inlined_call_operand.vmem [shape: bf16[128,128], index: 6, kind: input, shape index: {}]   ;;  %s1844_s8 = inlined_call_operand.vmem [shape: f32[8,128], index: 8, kind: output, shape index: {}]  }
   0x1   :  { %v975_v0 = vld [vmem:[%s1836_s2] sm:$0xf]  ;;  %v1130_v1 = vld [vmem:[%s1836_s2 + $0x8] sm:$0xf0]  ;;  %v1083_v2 = vld [vmem:[%s1837_s3 + $0xa8] sm:$0xf] }
   0x2   :  { %v976_v3 = vor.u32 %v1130_v1, %v975_v0  ;;  %v1154_v4 = vld [vmem:[%s1837_s3 + $0xb0] sm:$0xf0]  ;;  %v1274_v5 = vld [vmem:[%s1838_s0] sm:$0xff]  ;;  %v1071_v6 = vld [vmem:[%s1837_s3 + $0x90] sm:$0xf] }
   0x3   :  { %v1279_v7 = vor.u32 %v1154_v4, %v1083_v2  ;;  %v1151_v8 = vld [vmem:[%s1837_s3 + $0x98] sm:$0xf0]  ;;  %v1091_v9 = vld [vmem:[%s1837_s3 + $0xb0] sm:$0xf]  ;;  %v1079_v13 = vld [vmem:[%s1837_s3 + $0x98] sm:$0xf] }
   0x4   :  { %v1155_v10 = vld [vmem:[%s1837_s3 + $0xb8] sm:$0xf0]  ;;  %106 = vmatpush.bf16.msra.mxu0 %v976_v3  ;;  %v1293_v12 = vor.u32 %v1151_v8, %v1071_v6  ;;  %v1152_v14 = vld [vmem:[%s1837_s3 + $0xa0] sm:$0xf0]  ;;  %v1059_v15 = vld [vmem:[%s1837_s3 + $0x78] sm:$0xf] }
   0x5   :  { %v1290_v11 = vor.u32 %v1155_v10, %v1091_v9  ;;  %386 = vmatpush.bf16.msra.mxu3 %v1279_v7  ;;  %v1148_v16 = vld [vmem:[%s1837_s3 + $0x80] sm:$0xf0]  ;;  %v1308_v17 = vor.u32 %v1152_v14, %v1079_v13  ;;  %v1067_v18 = vld [vmem:[%s1837_s3 + $0x80] sm:$0xf]  ;;  %v1149_v19 = vld [vmem:[%s1837_s3 + $0x88] sm:$0xf0] }
   0x6   :  { %v1319_v20 = vor.u32 %v1148_v16, %v1059_v15  ;;  %v1047_v21 = vld [vmem:[%s1837_s3 + $0x60] sm:$0xf]  ;;  %v1145_v22 = vld [vmem:[%s1837_s3 + $0x68] sm:$0xf0]  ;;  %v1328_v23 = vor.u32 %v1149_v19, %v1067_v18  ;;  %v1055_v24 = vld [vmem:[%s1837_s3 + $0x68] sm:$0xf] }
   0x7   :  { %985 = vmatmul.msk.bf16.vlgmr.msra.gmra.mxu0 %vm86_vm0, %v1274_v5  ;;  %v1146_v25 = vld [vmem:[%s1837_s3 + $0x70] sm:$0xf0]  ;;  %v1337_v26 = vor.u32 %v1145_v22, %v1047_v21  ;;  %v1035_v27 = vld [vmem:[%s1837_s3 + $0x48] sm:$0xf]  ;;  %v1043_v30 = vld [vmem:[%s1837_s3 + $0x50] sm:$0xf] }
   0x8   :  { %412 = vmatpush.bf16.msrb.mxu0 %v1290_v11  ;;  %v1142_v28 = vld [vmem:[%s1837_s3 + $0x50] sm:$0xf0]  ;;  %v1346_v29 = vor.u32 %v1146_v25, %v1055_v24  ;;  %v1143_v31 = vld [vmem:[%s1837_s3 + $0x58] sm:$0xf0]  ;;  %v1023_v33 = vld [vmem:[%s1837_s3 + $0x30] sm:$0xf] }
   0x9   :  { %387 = vmatpush.bf16.msra.mxu3 %v1293_v12  ;;  %v1355_v32 = vor.u32 %v1142_v28, %v1035_v27  ;;  %v1139_v34 = vld [vmem:[%s1837_s3 + $0x38] sm:$0xf0]  ;;  %v1364_v35 = vor.u32 %v1143_v31, %v1043_v30  ;;  %v1369_v36 = vld [vmem:[%s1838_s0 + $0x8] sm:$0xff]  ;;  %v1031_v37 = vld [vmem:[%s1837_s3 + $0x38] sm:$0xf] }
   0xa   :  { %v1140_v38 = vld [vmem:[%s1837_s3 + $0x40] sm:$0xf0]  ;;  %v1378_v39 = vor.u32 %v1139_v34, %v1023_v33  ;;  %v1011_v40 = vld [vmem:[%s1837_s3 + $0x18] sm:$0xf]  ;;  %v977_v44 = vld [vmem:[%s1836_s2 + $0xc] sm:$0xf0] }
   0xb   :  { %v1136_v41 = vld [vmem:[%s1837_s3 + $0x20] sm:$0xf0]  ;;  %v1387_v42 = vor.u32 %v1140_v38, %v1031_v37  ;;  %v999_v45 = vld [vmem:[%s1837_s3] sm:$0xf]  ;;  %v1153_v46 = vld [vmem:[%s1837_s3 + $0xac] sm:$0xf] }
   0xc   :  { %413 = vmatpush.bf16.msrb.mxu0 %v1308_v17  ;;  %v1129_v43 = vld [vmem:[%s1836_s2 + $0x4] sm:$0xf]  ;;  %v1404_v48 = vor.u32 %v1136_v41, %v1011_v40  ;;  %v1085_v49 = vld [vmem:[%s1837_s3 + $0xb4] sm:$0xf0]  ;;  %v983_v50 = vld [vmem:[%s1836_s2 + $0x8] sm:$0xf] }
   0xd   :  { %388 = vmatpush.bf16.msra.mxu3 %v1319_v20  ;;  %v980_v47 = vor.u32 %v1129_v43, %v977_v44  ;;  %v1131_v51 = vld [vmem:[%s1836_s2 + $0x10] sm:$0xf0]  ;;  %v1133_v52 = vld [vmem:[%s1837_s3 + $0x8] sm:$0xf0]  ;;  %v1019_v53 = vld [vmem:[%s1837_s3 + $0x20] sm:$0xf]  ;;  %v1428_v57 = vor.u32 %v1153_v46, %v1085_v49 }
   0xe   :  { %v1137_v54 = vld [vmem:[%s1837_s3 + $0x28] sm:$0xf0]  ;;  %v984_v55 = vor.u32 %v1131_v51, %v983_v50  ;;  %v1431_v58 = vor.u32 %v1133_v52, %v999_v45  ;;  %v1436_v59 = vld [vmem:[%s1839_s1] sm:$0xff]  ;;  %v1150_v60 = vld [vmem:[%s1837_s3 + $0x94] sm:$0xf] }
   0xf   :  { %135 = vmatpush.bf16.msra.mxu1 %v980_v47  ;;  %v1425_v56 = vor.u32 %v1137_v54, %v1019_v53  ;;  %v1073_v61 = vld [vmem:[%s1837_s3 + $0x9c] sm:$0xf0]  ;;  %v1453_v62 = vpack.c.bf16 %v1436_v59, %v1436_v59  ;;  %v1147_v0 = vld [vmem:[%s1837_s3 + $0x7c] sm:$0xf]  ;;  %v1061_v1 = vld [vmem:[%s1837_s3 + $0x84] sm:$0xf0] }
  0x10   :  { %414 = vmatpush.bf16.msrb.mxu0 %v1328_v23  ;;  %164 = vmatpush.bf16.msra.mxu2 %v984_v55  ;;  %v1455_v63 = vor.u32 %v1150_v60, %v1073_v61  ;;  %v1007_v2 = vld [vmem:[%s1837_s3 + $0x8] sm:$0xf]  ;;  %v1134_v3 = vld [vmem:[%s1837_s3 + $0x10] sm:$0xf0]  ;;  %v1479_v6 = vor.u32 %v1147_v0, %v1061_v1  ;;  %v1144_v8 = vld [vmem:[%s1837_s3 + $0x64] sm:$0xf] }
  0x11   :  { %389 = vmatpush.bf16.msra.mxu3 %v1337_v26  ;;  %v1471_v4 = vor.u32 %v1134_v3, %v1007_v2  ;;  %v1049_v9 = vld [vmem:[%s1837_s3 + $0x6c] sm:$0xf0]  ;;  %v1141_v13 = vld [vmem:[%s1837_s3 + $0x4c] sm:$0xf]  ;;  %v1037_v14 = vld [vmem:[%s1837_s3 + $0x54] sm:$0xf0] }
  0x12   :  { %989 = vmatmul.msk.bf16.vlgmr.msra.gmra.mxu1 %vm86_vm0, %v1274_v5  ;;  %v1493_v10 = vor.u32 %v1144_v8, %v1049_v9  ;;  %v1505_v15 = vor.u32 %v1141_v13, %v1037_v14  ;;  %v1138_v16 = vld [vmem:[%s1837_s3 + $0x34] sm:$0xf]  ;;  %v1025_v18 = vld [vmem:[%s1837_s3 + $0x3c] sm:$0xf0]  ;;  %v1135_v21 = vld [vmem:[%s1837_s3 + $0x1c] sm:$0xf] }
  0x13   :  { %447 = vmatpush.bf16.msrb.mxu1 %v1279_v7  ;;  %993 = vmatmul.msk.bf16.vlgmr.msra.gmra.mxu2 %vm86_vm0, %v1274_v5  ;;  %v1127_v5 = vld [vmem:[%s1838_s0 + $0x10] sm:$0xff]  ;;  %v1521_v19 = vor.u32 %v1138_v16, %v1025_v18  ;;  %v1013_v22 = vld [vmem:[%s1837_s3 + $0x24] sm:$0xf0]  ;;  %v1128_v24 = vld [vmem:[%s1838_s0 + $0x18] sm:$0xff] }
  0x14   :  { %415 = vmatpush.bf16.msrb.mxu0 %v1346_v29  ;;  %460 = vmatpush.bf16.msrb.mxu2 %v1428_v57  ;;  %v1536_v25 = vor.u32 %v1135_v21, %v1013_v22  ;;  %v1132_v27 = vld [vmem:[%s1837_s3 + $0x4] sm:$0xf]  ;;  %v1001_v28 = vld [vmem:[%s1837_s3 + $0xc] sm:$0xf0]  ;;  %v42_v33 = vld [vmem:[%s1841_s4] sm:$0x7] }
  0x15   :  { %390 = vmatpush.bf16.msra.mxu3 %v1355_v32  ;;  %v1549_v30 = vor.u32 %v1132_v27, %v1001_v28  ;;  %v44_v34 = vperm.slane %v42_v33, 0  ;;  %v1618_v61 = vperm.slane %v42_v33, 1  ;;  %v1628_v8 = vperm.slane %v42_v33, 2 }
  0x17   :  { %986 = vmatmul.msk.bf16.gmra.mxu0 %vm86_vm0, %v1369_v36  ;;  %448 = vmatpush.bf16.msrb.mxu1 %v1293_v12 }
  0x18   :  { %416 = vmatpush.bf16.msrb.mxu0 %v1364_v35  ;;  %461 = vmatpush.bf16.msrb.mxu2 %v1455_v63 }
  0x19   :  { %391 = vmatpush.bf16.msra.mxu3 %v1378_v39 }
  0x1b   :  { %449 = vmatpush.bf16.msrb.mxu1 %v1319_v20 }
  0x1c   :  { %417 = vmatpush.bf16.msrb.mxu0 %v1387_v42  ;;  %462 = vmatpush.bf16.msrb.mxu2 %v1479_v6 }
  0x1d   :  { %392 = vmatpush.bf16.msra.mxu3 %v1404_v48 }
  0x1f   :  { %450 = vmatpush.bf16.msrb.mxu1 %v1337_v26 }
  0x20   :  { %418 = vmatpush.bf16.msrb.mxu0 %v1425_v56  ;;  %463 = vmatpush.bf16.msrb.mxu2 %v1493_v10 }
  0x21   :  { %393 = vmatpush.bf16.msra.mxu3 %v1431_v58 }
  0x22   :  { %990 = vmatmul.msk.bf16.gmra.mxu1 %vm86_vm0, %v1369_v36 }
  0x23   :  { %451 = vmatpush.bf16.msrb.mxu1 %v1355_v32  ;;  %994 = vmatmul.msk.bf16.gmra.mxu2 %vm86_vm0, %v1369_v36 }
  0x24   :  { %394 = vmatmul.bf16.vlgmr.msra.gmra.mxu3 %v1453_v62  ;;  %419 = vmatpush.bf16.msrb.mxu0 %v1471_v4 }
  0x25   :  { %399 = vmatpush.bf16.msrb.mxu3 %v1428_v57  ;;  %464 = vmatpush.bf16.msrb.mxu2 %v1505_v15 }
  0x27   :  { %987 = vmatmul.msk.bf16.gmra.mxu0 %vm86_vm0, %v1127_v5  ;;  %452 = vmatpush.bf16.msrb.mxu1 %v1378_v39 }
  0x28   :  { %508 = vmatpush.bf16.msra.mxu0 %v1279_v7 }
  0x29   :  { %400 = vmatpush.bf16.msrb.mxu3 %v1455_v63  ;;  %465 = vmatpush.bf16.msrb.mxu2 %v1521_v19 }
  0x2b   :  { %453 = vmatpush.bf16.msrb.mxu1 %v1404_v48 }
  0x2c   :  { %509 = vmatpush.bf16.msra.mxu0 %v1293_v12 }
  0x2d   :  { %401 = vmatpush.bf16.msrb.mxu3 %v1479_v6  ;;  %466 = vmatpush.bf16.msrb.mxu2 %v1536_v25 }
  0x2f   :  { %454 = vmatpush.bf16.msrb.mxu1 %v1431_v58 }
  0x30   :  { %510 = vmatpush.bf16.msra.mxu0 %v1319_v20 }
  0x31   :  { %402 = vmatpush.bf16.msrb.mxu3 %v1493_v10  ;;  %467 = vmatpush.bf16.msrb.mxu2 %v1549_v30 }
  0x32   :  { %991 = vmatmul.msk.bf16.gmra.mxu1 %vm86_vm0, %v1127_v5 }
  0x33   :  { %521 = vmatpush.bf16.msra.mxu1 %v1428_v57  ;;  %995 = vmatmul.msk.bf16.gmra.mxu2 %vm86_vm0, %v1127_v5  ;;  %v1626_v5 = vld [vmem:[%s1840_s5] ss:$0 sm:$0xff] }
  0x34   :  { %511 = vmatpush.bf16.msra.mxu0 %v1337_v26 }
  0x35   :  { %403 = vmatpush.bf16.msrb.mxu3 %v1505_v15  ;;  %534 = vmatpush.bf16.msra.mxu2 %v1290_v11 }
  0x37   :  { %988 = vmatmul.msk.bf16.gmra.mxu0 %vm86_vm0, %v1128_v24  ;;  %522 = vmatpush.bf16.msra.mxu1 %v1455_v63 }
  0x38   :  { %512 = vmatpush.bf16.msra.mxu0 %v1355_v32 }
  0x39   :  { %404 = vmatpush.bf16.msrb.mxu3 %v1521_v19  ;;  %535 = vmatpush.bf16.msra.mxu2 %v1308_v17 }
  0x3b   :  { %523 = vmatpush.bf16.msra.mxu1 %v1479_v6 }
  0x3c   :  { %513 = vmatpush.bf16.msra.mxu0 %v1378_v39 }
  0x3d   :  { %405 = vmatpush.bf16.msrb.mxu3 %v1536_v25  ;;  %536 = vmatpush.bf16.msra.mxu2 %v1328_v23 }
  0x3f   :  { %524 = vmatpush.bf16.msra.mxu1 %v1493_v10 }
  0x40   :  { %514 = vmatpush.bf16.msra.mxu0 %v1404_v48 }
  0x41   :  { %406 = vmatpush.bf16.msrb.mxu3 %v1549_v30  ;;  %537 = vmatpush.bf16.msra.mxu2 %v1346_v29 }
  0x42   :  { %992 = vmatmul.msk.bf16.gmra.mxu1 %vm86_vm0, %v1128_v24 }
  0x43   :  { %525 = vmatpush.bf16.msra.mxu1 %v1505_v15  ;;  %996 = vmatmul.msk.bf16.gmra.mxu2 %vm86_vm0, %v1128_v24 }
  0x44   :  { %407 = vmatmul.bf16.vlgmr.msrb.gmra.mxu3 %v1453_v62  ;;  %515 = vmatpush.bf16.msra.mxu0 %v1431_v58 }
  0x45   :  { %473 = vmatpush.bf16.msra.mxu3 %v1290_v11  ;;  %538 = vmatpush.bf16.msra.mxu2 %v1364_v35 }
  0x47   :  { %420 = vmatmul.bf16.vlgmr.msrb.gmra.mxu0 %v1453_v62  ;;  %526 = vmatpush.bf16.msra.mxu1 %v1521_v19 }
  0x48   :  { %582 = vmatpush.bf16.msrb.mxu0 %v1428_v57 }
  0x49   :  { %474 = vmatpush.bf16.msra.mxu3 %v1308_v17  ;;  %539 = vmatpush.bf16.msra.mxu2 %v1387_v42 }
  0x4b   :  { %527 = vmatpush.bf16.msra.mxu1 %v1536_v25 }
  0x4c   :  { %583 = vmatpush.bf16.msrb.mxu0 %v1455_v63 }
  0x4d   :  { %475 = vmatpush.bf16.msra.mxu3 %v1328_v23  ;;  %540 = vmatpush.bf16.msra.mxu2 %v1425_v56 }
  0x4f   :  { %528 = vmatpush.bf16.msra.mxu1 %v1549_v30 }
  0x50   :  { %584 = vmatpush.bf16.msrb.mxu0 %v1479_v6 }
  0x51   :  { %476 = vmatpush.bf16.msra.mxu3 %v1346_v29  ;;  %541 = vmatpush.bf16.msra.mxu2 %v1471_v4 }
  0x54   :  { %585 = vmatpush.bf16.msrb.mxu0 %v1493_v10 }
  0x55   :  { %477 = vmatpush.bf16.msra.mxu3 %v1364_v35 }
  0x58   :  { %586 = vmatpush.bf16.msrb.mxu0 %v1505_v15 }
  0x59   :  { %478 = vmatpush.bf16.msra.mxu3 %v1387_v42 }
  0x5c   :  { %587 = vmatpush.bf16.msrb.mxu0 %v1521_v19 }
  0x5d   :  { %479 = vmatpush.bf16.msra.mxu3 %v1425_v56 }
  0x60   :  { %588 = vmatpush.bf16.msrb.mxu0 %v1536_v25 }
  0x61   :  { %480 = vmatpush.bf16.msra.mxu3 %v1471_v4 }
  0x64   :  { %589 = vmatpush.bf16.msrb.mxu0 %v1549_v30 }
  0x65   :  { %569 = vmatpush.bf16.msrb.mxu3 %v1279_v7 }
  0x69   :  { %570 = vmatpush.bf16.msrb.mxu3 %v1293_v12 }
  0x6d   :  { %571 = vmatpush.bf16.msrb.mxu3 %v1319_v20 }
  0x71   :  { %572 = vmatpush.bf16.msrb.mxu3 %v1337_v26 }
  0x75   :  { %573 = vmatpush.bf16.msrb.mxu3 %v1355_v32 }
  0x79   :  { %574 = vmatpush.bf16.msrb.mxu3 %v1378_v39 }
  0x7d   :  { %575 = vmatpush.bf16.msrb.mxu3 %v1404_v48 }
  0x81   :  { %576 = vmatpush.bf16.msrb.mxu3 %v1431_v58 }
  0x84   :  { %v108_v31 = vpop.f32.mrf.mxu0 }
  0x85   :  { %v109_v50 = vadd.f32 %v108_v31, %v44_v34 }
  0x8c   :  { %v110_v36 = vpop.f32.mrf.mxu0 }
  0x8d   :  { %v1606_v37 = vadd.f32 %v110_v36, %v44_v34 }
  0x8f   :  { %v137_v1 = vpop.f32.mrf.mxu1 }
  0x90   :  { %v138_v3 = vadd.f32 %v137_v1, %v1618_v61 }
  0x94   :  { %v113_v38 = vpop.f32.mrf.mxu0 }
  0x95   :  { %v1608_v40 = vadd.f32 %v113_v38, %v44_v34 }
  0x96   :  { %v166_v21 = vpop.f32.mrf.mxu2 }
  0x97   :  { %v167_v22 = vadd.f32 %v166_v21, %v1628_v8 }
  0x9c   :  { %v115_v41 = vpop.f32.mrf.mxu0 }
  0x9d   :  { %v1610_v43 = vadd.f32 %v115_v41, %v44_v34 }
  0xa4   :  { %v118_v44 = vpop.f32.mrf.mxu0 }
  0xa5   :  { %v1612_v45 = vadd.f32 %v118_v44, %v44_v34 }
  0xa7   :  { %v395_v46 = vpop.f32.mrf.mxu3 }
  0xa8   :  { %v425_v52 = vadd.f32 %v395_v46, %v109_v50 }
  0xaa   :  { %v427_v53 = vmul.f32 0.5, %v425_v52  ;;  %v168_v52 = vpop.f32.mrf.mxu2 }
  0xac   :  { %v120_v47 = vpop.f32.mrf.mxu0  ;;  %1166 = vtanh.f32 %v427_v53 }
  0xad   :  { %v1614_v49 = vadd.f32 %v120_v47, %v44_v34 }
  0xaf   :  { %v397_v51 = vpop.f32.mrf.mxu3 }
  0xb2   :  { %v1167_v0 = vpop.eup %1166 }
  0xb3   :  { %v431_v2 = vmul.f32 0.5, %v1167_v0 }
  0xb4   :  { %v123_v54 = vpop.f32.mrf.mxu0 }
  0xb5   :  { %v1616_v55 = vadd.f32 %v123_v54, %v44_v34  ;;  %v433_v14 = vadd.f32 0.5, %v431_v2  ;;  %v1663_v54 = vpop.f32.mrf.mxu2 }
  0xbc   :  { %v125_v60 = vpop.f32.mrf.mxu0 }
  0xbd   :  { %v1620_v62 = vadd.f32 %v125_v60, %v44_v34  ;;  %v1667_v0 = vpop.f32.mrf.mxu2 }
  0xc4   :  { %v421_v13 = vpop.f32.mrf.mxu0 }
  0xc5   :  { %v435_v18 = vadd.f32 %v1626_v5, %v421_v13  ;;  %v1671_v2 = vpop.f32.mrf.mxu2 }
  0xc7   :  { %v408_v9 = vpop.f32.mrf.mxu3  ;;  %v436_v27 = vmul.f32 %v435_v18, %v433_v14 }
  0xc8   :  { %v426_v16 = vadd.f32 %v408_v9, %v138_v3 }
  0xc9   :  { %v437_v28 = vadd.f32 %v436_v27, %v167_v22 }
  0xca   :  { %v428_v24 = vmul.f32 0.5, %v426_v16 }
  0xcc   :  { %1168 = vtanh.f32 %v428_v24  ;;  %v423_v34 = vpop.f32.mrf.mxu0 }
  0xcd   :  { %1170 = vtanh.f32 %v437_v28  ;;  %v1675_v9 = vpop.f32.mrf.mxu2 }
  0xcf   :  { %v410_v31 = vpop.f32.mrf.mxu3 }
  0xd2   :  { %v1169_v36 = vpop.eup %1168 }
  0xd3   :  { %v432_v38 = vmul.f32 0.5, %v1169_v36  ;;  %v1171_v44 = vpop.eup %1170 }
  0xd5   :  { %v434_v33 = vadd.f32 0.5, %v432_v38  ;;  %v1679_v14 = vpop.f32.mrf.mxu2 }
  0xd7   :  { %v439_v41 = vsub.f32 1.0, %v434_v33  ;;  %v441_v46 = vmul.f32 %v434_v33, %v1436_v59  ;;  %v139_v59 = vpop.f32.mrf.mxu1 }
  0xd8   :  { %v140_v27 = vadd.f32 %v139_v59, %v1618_v61 }
  0xd9   :  { %v440_v47 = vmul.f32 %v1171_v44, %v439_v41 }
  0xdb   :  { %v1633_v50 = vadd.f32 %v441_v46, %v440_v47 }
  0xdd   :  { %v446_v51 = vpack.c.bf16 %v1633_v50, %v1633_v50  ;;  %v1683_v18 = vpop.f32.mrf.mxu2 }
  0xde   :  { %1845 = vst [vmem:[#allocation3_spill] sm:$0xff] %v1683_v18  ;;  %v169_v18 = vadd.f32 %v168_v52, %v1628_v8 }
  0xdf   :  { %455 = vmatmul.bf16.vlgmr.msrb.gmra.mxu1 %v446_v51  ;;  %468 = vmatmul.bf16.vlgmr.msrb.gmra.mxu2 %v446_v51  ;;  %v1661_v53 = vpop.f32.mrf.mxu1 }
  0xe0   :  { %481 = vmatmul.bf16.vlgmr.msra.gmra.mxu3 %v446_v51  ;;  %595 = vmatpush.bf16.msrb.mxu1 %v1290_v11 }
  0xe1   :  { %630 = vmatpush.bf16.msrb.mxu2 %v1279_v7  ;;  %643 = vmatpush.bf16.msra.mxu3 %v1428_v57 }
  0xe4   :  { %596 = vmatpush.bf16.msrb.mxu1 %v1308_v17 }
  0xe5   :  { %631 = vmatpush.bf16.msrb.mxu2 %v1293_v12  ;;  %644 = vmatpush.bf16.msra.mxu3 %v1455_v63 }
  0xe7   :  { %v1665_v60 = vpop.f32.mrf.mxu1 }
  0xe8   :  { %597 = vmatpush.bf16.msrb.mxu1 %v1328_v23 }
  0xe9   :  { %632 = vmatpush.bf16.msrb.mxu2 %v1319_v20  ;;  %645 = vmatpush.bf16.msra.mxu3 %v1479_v6 }
  0xec   :  { %598 = vmatpush.bf16.msrb.mxu1 %v1346_v29 }
  0xed   :  { %633 = vmatpush.bf16.msrb.mxu2 %v1337_v26  ;;  %646 = vmatpush.bf16.msra.mxu3 %v1493_v10 }
  0xef   :  { %v1669_v1 = vpop.f32.mrf.mxu1 }
  0xf0   :  { %599 = vmatpush.bf16.msrb.mxu1 %v1364_v35 }
  0xf1   :  { %634 = vmatpush.bf16.msrb.mxu2 %v1355_v32  ;;  %647 = vmatpush.bf16.msra.mxu3 %v1505_v15 }
  0xf4   :  { %600 = vmatpush.bf16.msrb.mxu1 %v1387_v42 }
  0xf5   :  { %635 = vmatpush.bf16.msrb.mxu2 %v1378_v39  ;;  %648 = vmatpush.bf16.msra.mxu3 %v1521_v19 }
  0xf7   :  { %v1673_v3 = vpop.f32.mrf.mxu1 }
  0xf8   :  { %601 = vmatpush.bf16.msrb.mxu1 %v1425_v56 }
  0xf9   :  { %636 = vmatpush.bf16.msrb.mxu2 %v1404_v48  ;;  %649 = vmatpush.bf16.msra.mxu3 %v1536_v25 }
  0xfc   :  { %602 = vmatpush.bf16.msrb.mxu1 %v1471_v4 }
  0xfd   :  { %637 = vmatpush.bf16.msrb.mxu2 %v1431_v58  ;;  %650 = vmatpush.bf16.msra.mxu3 %v1549_v30 }
  0xff   :  { %v1677_v13 = vpop.f32.mrf.mxu1 }
 0x107   :  { %v1681_v16 = vpop.f32.mrf.mxu1 }
 0x15c   :  { %v456_v21 = vpop.f32.mrf.mxu1 }
 0x15d   :  { %v486_v22 = vadd.f32 %v456_v21, %v1606_v37 }
 0x15f   :  { %v488_v24 = vmul.f32 0.5, %v486_v22 }
 0x161   :  { %1172 = vtanh.f32 %v488_v24 }
 0x162   :  { %v469_v28 = vpop.f32.mrf.mxu2 }
 0x163   :  { %v487_v31 = vadd.f32 %v469_v28, %v140_v27  ;;  %v482_v34 = vpop.f32.mrf.mxu3 }
 0x164   :  { %v458_v36 = vpop.f32.mrf.mxu1  ;;  %v496_v46 = vadd.f32 %v1626_v5, %v482_v34 }
 0x165   :  { %v489_v38 = vmul.f32 0.5, %v487_v31 }
 0x167   :  { %v1173_v33 = vpop.eup %1172  ;;  %1174 = vtanh.f32 %v489_v38 }
 0x168   :  { %v492_v41 = vmul.f32 0.5, %v1173_v33 }
 0x16a   :  { %v494_v44 = vadd.f32 0.5, %v492_v41  ;;  %v471_v47 = vpop.f32.mrf.mxu2 }
 0x16b   :  { %v484_v51 = vpop.f32.mrf.mxu3 }
 0x16c   :  { %v497_v37 = vmul.f32 %v496_v46, %v494_v44 }
 0x16d   :  { %v1175_v21 = vpop.eup %1174 }
 0x16e   :  { %v493_v22 = vmul.f32 0.5, %v1175_v21  ;;  %v498_v59 = vadd.f32 %v497_v37, %v169_v18 }
 0x170   :  { %1176 = vtanh.f32 %v498_v59  ;;  %v495_v24 = vadd.f32 0.5, %v493_v22 }
 0x172   :  { %v500_v27 = vsub.f32 1.0, %v495_v24  ;;  %v502_v31 = vmul.f32 %v495_v24, %v1633_v50  ;;  %v143_v50 = vadd.f32 %v1661_v53, %v1618_v61  ;;  %v172_v53 = vadd.f32 %v1663_v54, %v1628_v8 }
 0x176   :  { %v1177_v28 = vpop.eup %1176 }
 0x177   :  { %v501_v36 = vmul.f32 %v1177_v28, %v500_v27 }
 0x179   :  { %v503_v38 = vadd.f32 %v502_v31, %v501_v36 }
 0x17b   :  { %v507_v33 = vpack.c.bf16 %v503_v38, %v503_v38 }
 0x17d   :  { %516 = vmatmul.bf16.vlgmr.msra.gmra.mxu0 %v507_v33  ;;  %529 = vmatmul.bf16.vlgmr.msra.gmra.mxu1 %v507_v33 }
 0x17e   :  { %542 = vmatmul.bf16.vlgmr.msra.gmra.mxu2 %v507_v33  ;;  %656 = vmatpush.bf16.msra.mxu0 %v1290_v11 }
 0x17f   :  { %691 = vmatpush.bf16.msra.mxu1 %v1279_v7  ;;  %704 = vmatpush.bf16.msra.mxu2 %v1428_v57 }
 0x182   :  { %657 = vmatpush.bf16.msra.mxu0 %v1308_v17 }
 0x183   :  { %692 = vmatpush.bf16.msra.mxu1 %v1293_v12  ;;  %705 = vmatpush.bf16.msra.mxu2 %v1455_v63 }
 0x186   :  { %658 = vmatpush.bf16.msra.mxu0 %v1328_v23 }
 0x187   :  { %693 = vmatpush.bf16.msra.mxu1 %v1319_v20  ;;  %706 = vmatpush.bf16.msra.mxu2 %v1479_v6 }
 0x18a   :  { %659 = vmatpush.bf16.msra.mxu0 %v1346_v29 }
 0x18b   :  { %694 = vmatpush.bf16.msra.mxu1 %v1337_v26  ;;  %707 = vmatpush.bf16.msra.mxu2 %v1493_v10 }
 0x18e   :  { %660 = vmatpush.bf16.msra.mxu0 %v1364_v35 }
 0x18f   :  { %695 = vmatpush.bf16.msra.mxu1 %v1355_v32  ;;  %708 = vmatpush.bf16.msra.mxu2 %v1505_v15 }
 0x192   :  { %661 = vmatpush.bf16.msra.mxu0 %v1387_v42 }
 0x193   :  { %696 = vmatpush.bf16.msra.mxu1 %v1378_v39  ;;  %709 = vmatpush.bf16.msra.mxu2 %v1521_v19 }
 0x196   :  { %662 = vmatpush.bf16.msra.mxu0 %v1425_v56 }
 0x197   :  { %697 = vmatpush.bf16.msra.mxu1 %v1404_v48  ;;  %710 = vmatpush.bf16.msra.mxu2 %v1536_v25 }
 0x19a   :  { %663 = vmatpush.bf16.msra.mxu0 %v1471_v4 }
 0x19b   :  { %698 = vmatpush.bf16.msra.mxu1 %v1431_v58  ;;  %711 = vmatpush.bf16.msra.mxu2 %v1549_v30 }
 0x1fa   :  { %v517_v52 = vpop.f32.mrf.mxu0  ;;  %v530_v18 = vpop.f32.mrf.mxu1 }
 0x1fb   :  { %v547_v34 = vadd.f32 %v517_v52, %v1608_v40  ;;  %v548_v41 = vadd.f32 %v530_v18, %v143_v50 }
 0x1fd   :  { %v549_v44 = vmul.f32 0.5, %v547_v34  ;;  %v550_v46 = vmul.f32 0.5, %v548_v41 }
 0x1ff   :  { %1178 = vtanh.f32 %v549_v44 }
 0x200   :  { %1180 = vtanh.f32 %v550_v46  ;;  %v145_v46 = vadd.f32 %v1665_v60, %v1618_v61  ;;  %v174_v60 = vadd.f32 %v1667_v0, %v1628_v8  ;;  %v177_v0 = vadd.f32 %v1671_v2, %v1628_v8 }
 0x201   :  { %v543_v47 = vpop.f32.mrf.mxu2 }
 0x202   :  { %v519_v51 = vpop.f32.mrf.mxu0  ;;  %v532_v37 = vpop.f32.mrf.mxu1  ;;  %v557_v27 = vadd.f32 %v1626_v5, %v543_v47 }
 0x205   :  { %v1179_v21 = vpop.eup %1178 }
 0x206   :  { %v553_v22 = vmul.f32 0.5, %v1179_v21  ;;  %v1181_v59 = vpop.eup %1180 }
 0x207   :  { %v554_v40 = vmul.f32 0.5, %v1181_v59 }
 0x208   :  { %v555_v24 = vadd.f32 0.5, %v553_v22 }
 0x209   :  { %v545_v28 = vpop.f32.mrf.mxu2  ;;  %v556_v33 = vadd.f32 0.5, %v554_v40 }
 0x20a   :  { %v558_v31 = vmul.f32 %v557_v27, %v555_v24 }
 0x20b   :  { %v561_v50 = vsub.f32 1.0, %v556_v33  ;;  %v563_v18 = vmul.f32 %v556_v33, %v503_v38 }
 0x20c   :  { %v559_v36 = vadd.f32 %v558_v31, %v172_v53 }
 0x20e   :  { %1182 = vtanh.f32 %v559_v36 }
 0x214   :  { %v1183_v52 = vpop.eup %1182 }
 0x215   :  { %v562_v34 = vmul.f32 %v1183_v52, %v561_v50 }
 0x217   :  { %v564_v41 = vadd.f32 %v563_v18, %v562_v34 }
 0x219   :  { %v568_v44 = vpack.c.bf16 %v564_v41, %v564_v41 }
 0x21b   :  { %577 = vmatmul.bf16.vlgmr.msrb.gmra.mxu3 %v568_v44  ;;  %590 = vmatmul.bf16.vlgmr.msrb.gmra.mxu0 %v568_v44 }
 0x21c   :  { %603 = vmatmul.bf16.vlgmr.msrb.gmra.mxu1 %v568_v44  ;;  %717 = vmatpush.bf16.msrb.mxu3 %v1290_v11 }
 0x21d   :  { %752 = vmatpush.bf16.msrb.mxu0 %v1279_v7  ;;  %765 = vmatpush.bf16.msrb.mxu1 %v1428_v57 }
 0x220   :  { %718 = vmatpush.bf16.msrb.mxu3 %v1308_v17 }
 0x221   :  { %753 = vmatpush.bf16.msrb.mxu0 %v1293_v12  ;;  %766 = vmatpush.bf16.msrb.mxu1 %v1455_v63 }
 0x224   :  { %719 = vmatpush.bf16.msrb.mxu3 %v1328_v23 }
 0x225   :  { %754 = vmatpush.bf16.msrb.mxu0 %v1319_v20  ;;  %767 = vmatpush.bf16.msrb.mxu1 %v1479_v6 }
 0x228   :  { %720 = vmatpush.bf16.msrb.mxu3 %v1346_v29 }
 0x229   :  { %755 = vmatpush.bf16.msrb.mxu0 %v1337_v26  ;;  %768 = vmatpush.bf16.msrb.mxu1 %v1493_v10 }
 0x22c   :  { %721 = vmatpush.bf16.msrb.mxu3 %v1364_v35 }
 0x22d   :  { %756 = vmatpush.bf16.msrb.mxu0 %v1355_v32  ;;  %769 = vmatpush.bf16.msrb.mxu1 %v1505_v15 }
 0x230   :  { %722 = vmatpush.bf16.msrb.mxu3 %v1387_v42 }
 0x231   :  { %757 = vmatpush.bf16.msrb.mxu0 %v1378_v39  ;;  %770 = vmatpush.bf16.msrb.mxu1 %v1521_v19 }
 0x234   :  { %723 = vmatpush.bf16.msrb.mxu3 %v1425_v56 }
 0x235   :  { %758 = vmatpush.bf16.msrb.mxu0 %v1404_v48  ;;  %771 = vmatpush.bf16.msrb.mxu1 %v1536_v25 }
 0x238   :  { %724 = vmatpush.bf16.msrb.mxu3 %v1471_v4 }
 0x239   :  { %759 = vmatpush.bf16.msrb.mxu0 %v1431_v58  ;;  %772 = vmatpush.bf16.msrb.mxu1 %v1549_v30 }
 0x298   :  { %v591_v54 = vpop.f32.mrf.mxu0 }
 0x299   :  { %v604_v38 = vpop.f32.mrf.mxu1  ;;  %v609_v47 = vadd.f32 %v591_v54, %v145_v46 }
 0x29a   :  { %v618_v40 = vadd.f32 %v1626_v5, %v604_v38 }
 0x29b   :  { %v611_v24 = vmul.f32 0.5, %v609_v47 }
 0x29e   :  { %v578_v51 = vpop.f32.mrf.mxu3 }
 0x29f   :  { %v608_v37 = vadd.f32 %v578_v51, %v1610_v43 }
 0x2a0   :  { %v593_v21 = vpop.f32.mrf.mxu0 }
 0x2a1   :  { %v610_v22 = vmul.f32 0.5, %v608_v37  ;;  %v606_v59 = vpop.f32.mrf.mxu1 }
 0x2a3   :  { %1184 = vtanh.f32 %v610_v22 }
 0x2a4   :  { %1186 = vtanh.f32 %v611_v24 }
 0x2a6   :  { %v580_v27 = vpop.f32.mrf.mxu3 }
 0x2a9   :  { %v1185_v28 = vpop.eup %1184 }
 0x2aa   :  { %v614_v53 = vmul.f32 0.5, %v1185_v28  ;;  %v1187_v31 = vpop.eup %1186 }
 0x2ab   :  { %v615_v50 = vmul.f32 0.5, %v1187_v31 }
 0x2ac   :  { %v616_v36 = vadd.f32 0.5, %v614_v53 }
 0x2ad   :  { %v617_v43 = vadd.f32 0.5, %v615_v50 }
 0x2ae   :  { %v619_v33 = vmul.f32 %v618_v40, %v616_v36 }
 0x2af   :  { %v622_v18 = vsub.f32 1.0, %v617_v43  ;;  %v624_v44 = vmul.f32 %v617_v43, %v564_v41 }
 0x2b0   :  { %v620_v52 = vadd.f32 %v619_v33, %v174_v60 }
 0x2b2   :  { %1188 = vtanh.f32 %v620_v52 }
 0x2b8   :  { %v1189_v34 = vpop.eup %1188 }
 0x2b9   :  { %v623_v54 = vmul.f32 %v1189_v34, %v622_v18 }
 0x2bb   :  { %v625_v46 = vadd.f32 %v624_v44, %v623_v54 }
 0x2bd   :  { %v629_v47 = vpack.c.bf16 %v625_v46, %v625_v46 }
 0x2bf   :  { %638 = vmatmul.bf16.vlgmr.msrb.gmra.mxu2 %v629_v47  ;;  %651 = vmatmul.bf16.vlgmr.msra.gmra.mxu3 %v629_v47 }
 0x2c0   :  { %664 = vmatmul.bf16.vlgmr.msra.gmra.mxu0 %v629_v47  ;;  %778 = vmatpush.bf16.msrb.mxu2 %v1290_v11  ;;  %v153_v47 = vadd.f32 %v1677_v13, %v1618_v61  ;;  %v182_v13 = vadd.f32 %v1679_v14, %v1628_v8  ;;  %v1162_v14 = vld [vmem:[%s1843_s6 + $0x30] sm:$0xff] }
 0x2c1   :  { %813 = vmatpush.bf16.msra.mxu3 %v1279_v7  ;;  %826 = vmatpush.bf16.msra.mxu0 %v1428_v57 }
 0x2c4   :  { %779 = vmatpush.bf16.msrb.mxu2 %v1308_v17 }
 0x2c5   :  { %814 = vmatpush.bf16.msra.mxu3 %v1293_v12  ;;  %827 = vmatpush.bf16.msra.mxu0 %v1455_v63  ;;  %v148_v12 = vadd.f32 %v1669_v1, %v1618_v61 }
 0x2c8   :  { %780 = vmatpush.bf16.msrb.mxu2 %v1328_v23 }
 0x2c9   :  { %815 = vmatpush.bf16.msra.mxu3 %v1319_v20  ;;  %828 = vmatpush.bf16.msra.mxu0 %v1479_v6 }
 0x2cc   :  { %781 = vmatpush.bf16.msrb.mxu2 %v1346_v29 }
 0x2cd   :  { %816 = vmatpush.bf16.msra.mxu3 %v1337_v26  ;;  %829 = vmatpush.bf16.msra.mxu0 %v1493_v10 }
 0x2d0   :  { %782 = vmatpush.bf16.msrb.mxu2 %v1364_v35 }
 0x2d1   :  { %817 = vmatpush.bf16.msra.mxu3 %v1355_v32  ;;  %830 = vmatpush.bf16.msra.mxu0 %v1505_v15 }
 0x2d4   :  { %783 = vmatpush.bf16.msrb.mxu2 %v1387_v42 }
 0x2d5   :  { %818 = vmatpush.bf16.msra.mxu3 %v1378_v39  ;;  %831 = vmatpush.bf16.msra.mxu0 %v1521_v19 }
 0x2d8   :  { %784 = vmatpush.bf16.msrb.mxu2 %v1425_v56 }
 0x2d9   :  { %819 = vmatpush.bf16.msra.mxu3 %v1404_v48  ;;  %832 = vmatpush.bf16.msra.mxu0 %v1536_v25 }
 0x2dc   :  { %785 = vmatpush.bf16.msrb.mxu2 %v1471_v4 }
 0x2dd   :  { %820 = vmatpush.bf16.msra.mxu3 %v1431_v58  ;;  %833 = vmatpush.bf16.msra.mxu0 %v1549_v30 }
 0x33d   :  { %v665_v7 = vpop.f32.mrf.mxu0 }
 0x33e   :  { %v679_v25 = vadd.f32 %v1626_v5, %v665_v7 }
 0x342   :  { %v639_v20 = vpop.f32.mrf.mxu2  ;;  %v652_v26 = vpop.f32.mrf.mxu3 }
 0x343   :  { %v669_v32 = vadd.f32 %v639_v20, %v1612_v45  ;;  %v670_v39 = vadd.f32 %v652_v26, %v148_v12 }
 0x345   :  { %v671_v57 = vmul.f32 0.5, %v669_v32  ;;  %v667_v63 = vpop.f32.mrf.mxu0  ;;  %v672_v48 = vmul.f32 0.5, %v670_v39 }
 0x347   :  { %1190 = vtanh.f32 %v671_v57 }
 0x348   :  { %1192 = vtanh.f32 %v672_v48 }
 0x34a   :  { %v641_v6 = vpop.f32.mrf.mxu2  ;;  %v654_v10 = vpop.f32.mrf.mxu3 }
 0x34d   :  { %v1191_v15 = vpop.eup %1190 }
 0x34e   :  { %v675_v58 = vmul.f32 0.5, %v1191_v15  ;;  %v1193_v19 = vpop.eup %1192 }
 0x34f   :  { %v676_v41 = vmul.f32 0.5, %v1193_v19 }
 0x350   :  { %v677_v30 = vadd.f32 0.5, %v675_v58 }
 0x351   :  { %v678_v38 = vadd.f32 0.5, %v676_v41 }
 0x352   :  { %v680_v1 = vmul.f32 %v679_v25, %v677_v30 }
 0x353   :  { %v683_v51 = vsub.f32 1.0, %v678_v38  ;;  %v685_v22 = vmul.f32 %v678_v38, %v625_v46 }
 0x354   :  { %v681_v45 = vadd.f32 %v680_v1, %v177_v0 }
 0x356   :  { %1194 = vtanh.f32 %v681_v45 }
 0x35c   :  { %v1195_v37 = vpop.eup %1194 }
 0x35d   :  { %v684_v21 = vmul.f32 %v1195_v37, %v683_v51 }
 0x35f   :  { %v686_v59 = vadd.f32 %v685_v22, %v684_v21  ;;  %v1163_v21 = vld [vmem:[%s1843_s6 + $0x38] sm:$0xff]  ;;  %v1161_v22 = vld [vmem:[%s1843_s6 + $0x28] sm:$0xff] }
 0x361   :  { %v690_v24 = vpack.c.bf16 %v686_v59, %v686_v59 }
 0x363   :  { %699 = vmatmul.bf16.vlgmr.msra.gmra.mxu1 %v690_v24  ;;  %712 = vmatmul.bf16.vlgmr.msra.gmra.mxu2 %v690_v24 }
 0x364   :  { %725 = vmatmul.bf16.vlgmr.msrb.gmra.mxu3 %v690_v24  ;;  %839 = vmatpush.bf16.msra.mxu1 %v1290_v11  ;;  %v150_v11 = vadd.f32 %v1673_v3, %v1618_v61  ;;  %v1159_v24 = vld [vmem:[%s1843_s6 + $0x18] sm:$0xff] }
 0x365   :  { %939 = vmatpush.bf16.msra.mxu2 %v1163_v21 }
 0x368   :  { %840 = vmatpush.bf16.msra.mxu1 %v1308_v17 }
 0x369   :  { %940 = vmatpush.bf16.msra.mxu2 %v1162_v14 }
 0x36c   :  { %841 = vmatpush.bf16.msra.mxu1 %v1328_v23 }
 0x36d   :  { %941 = vmatpush.bf16.msra.mxu2 %v1161_v22 }
 0x370   :  { %842 = vmatpush.bf16.msra.mxu1 %v1346_v29 }
 0x374   :  { %843 = vmatpush.bf16.msra.mxu1 %v1364_v35 }
 0x378   :  { %844 = vmatpush.bf16.msra.mxu1 %v1387_v42 }
 0x37c   :  { %845 = vmatpush.bf16.msra.mxu1 %v1425_v56 }
 0x380   :  { %846 = vmatpush.bf16.msra.mxu1 %v1471_v4 }
 0x3e0   :  { %v700_v2 = vpop.f32.mrf.mxu1 }
 0x3e1   :  { %v730_v27 = vadd.f32 %v700_v2, %v1614_v49  ;;  %v179_v49 = vadd.f32 %v1675_v9, %v1628_v8  ;;  %v1158_v2 = vld [vmem:[%s1843_s6 + $0x10] sm:$0xff] }
 0x3e3   :  { %v732_v28 = vmul.f32 0.5, %v730_v27  ;;  %v1157_v27 = vld [vmem:[%s1843_s6 + $0x8] sm:$0xff] }
 0x3e5   :  { %1196 = vtanh.f32 %v732_v28 }
 0x3e6   :  { %v713_v17 = vpop.f32.mrf.mxu2 }
 0x3e7   :  { %v731_v23 = vadd.f32 %v713_v17, %v150_v11  ;;  %v726_v53 = vpop.f32.mrf.mxu3  ;;  %v1156_v17 = vld [vmem:[%s1843_s6] sm:$0xff] }
 0x3e8   :  { %v702_v29 = vpop.f32.mrf.mxu1  ;;  %v740_v56 = vadd.f32 %v1626_v5, %v726_v53 }
 0x3e9   :  { %v733_v31 = vmul.f32 0.5, %v731_v23  ;;  %v155_v23 = vadd.f32 %v1681_v16, %v1618_v61  ;;  %v1846_v61 = vld [vmem:[#allocation3_spill] sm:$0xff] }
 0x3ea   :  { %v184_v16 = vadd.f32 %v1846_v61, %v1628_v8 }
 0x3eb   :  { %v1197_v35 = vpop.eup %1196  ;;  %1198 = vtanh.f32 %v733_v31 }
 0x3ec   :  { %v736_v42 = vmul.f32 0.5, %v1197_v35 }
 0x3ee   :  { %v738_v40 = vadd.f32 0.5, %v736_v42  ;;  %v715_v4 = vpop.f32.mrf.mxu2 }
 0x3ef   :  { %v728_v36 = vpop.f32.mrf.mxu3 }
 0x3f0   :  { %v741_v60 = vmul.f32 %v740_v56, %v738_v40 }
 0x3f1   :  { %v1199_v33 = vpop.eup %1198 }
 0x3f2   :  { %v737_v3 = vmul.f32 0.5, %v1199_v33  ;;  %v742_v50 = vadd.f32 %v741_v60, %v179_v49 }
 0x3f4   :  { %1200 = vtanh.f32 %v742_v50  ;;  %v739_v52 = vadd.f32 0.5, %v737_v3 }
 0x3f6   :  { %v744_v43 = vsub.f32 1.0, %v739_v52  ;;  %v746_v34 = vmul.f32 %v739_v52, %v686_v59  ;;  %v1160_v59 = vld [vmem:[%s1843_s6 + $0x20] sm:$0xff] }
 0x3f7   :  { %942 = vmatpush.bf16.msra.mxu2 %v1160_v59 }
 0x3fa   :  { %v1201_v18 = vpop.eup %1200 }
 0x3fb   :  { %v745_v44 = vmul.f32 %v1201_v18, %v744_v43  ;;  %943 = vmatpush.bf16.msra.mxu2 %v1159_v24 }
 0x3fd   :  { %v747_v54 = vadd.f32 %v746_v34, %v745_v44 }
 0x3ff   :  { %v751_v46 = vpack.c.bf16 %v747_v54, %v747_v54  ;;  %944 = vmatpush.bf16.msra.mxu2 %v1158_v2 }
 0x401   :  { %760 = vmatmul.bf16.vlgmr.msrb.gmra.mxu0 %v751_v46  ;;  %773 = vmatmul.bf16.vlgmr.msrb.gmra.mxu1 %v751_v46 }
 0x402   :  { %786 = vmatmul.bf16.vlgmr.msrb.gmra.mxu2 %v751_v46 }
 0x403   :  { %945 = vmatpush.bf16.msra.mxu2 %v1157_v27 }
 0x407   :  { %946 = vmatpush.bf16.msra.mxu2 %v1156_v17 }
 0x47e   :  { %v761_v7 = vpop.f32.mrf.mxu0  ;;  %v774_v9 = vpop.f32.mrf.mxu1 }
 0x47f   :  { %v791_v12 = vadd.f32 %v761_v7, %v1616_v55  ;;  %v792_v20 = vadd.f32 %v774_v9, %v153_v47 }
 0x481   :  { %v793_v26 = vmul.f32 0.5, %v791_v12  ;;  %v794_v32 = vmul.f32 0.5, %v792_v20 }
 0x483   :  { %1202 = vtanh.f32 %v793_v26 }
 0x484   :  { %1204 = vtanh.f32 %v794_v32 }
 0x485   :  { %v787_v39 = vpop.f32.mrf.mxu2 }
 0x486   :  { %v763_v57 = vpop.f32.mrf.mxu0  ;;  %v776_v63 = vpop.f32.mrf.mxu1  ;;  %v801_v58 = vadd.f32 %v1626_v5, %v787_v39 }
 0x489   :  { %v1203_v48 = vpop.eup %1202 }
 0x48a   :  { %v797_v6 = vmul.f32 0.5, %v1203_v48  ;;  %v1205_v10 = vpop.eup %1204 }
 0x48b   :  { %v798_v55 = vmul.f32 0.5, %v1205_v10 }
 0x48c   :  { %v799_v15 = vadd.f32 0.5, %v797_v6 }
 0x48d   :  { %v789_v19 = vpop.f32.mrf.mxu2  ;;  %v800_v0 = vadd.f32 0.5, %v798_v55 }
 0x48e   :  { %v802_v25 = vmul.f32 %v801_v58, %v799_v15 }
 0x48f   :  { %v805_v1 = vsub.f32 1.0, %v800_v0  ;;  %v807_v45 = vmul.f32 %v800_v0, %v747_v54 }
 0x490   :  { %v803_v30 = vadd.f32 %v802_v25, %v182_v13 }
 0x492   :  { %1206 = vtanh.f32 %v803_v30 }
 0x498   :  { %v1207_v41 = vpop.eup %1206 }
 0x499   :  { %v806_v38 = vmul.f32 %v1207_v41, %v805_v1 }
 0x49b   :  { %v808_v51 = vadd.f32 %v807_v45, %v806_v38 }
 0x49d   :  { %v812_v37 = vpack.c.bf16 %v808_v51, %v808_v51 }
 0x49f   :  { %821 = vmatmul.bf16.vlgmr.msra.gmra.mxu3 %v812_v37  ;;  %834 = vmatmul.bf16.vlgmr.msra.gmra.mxu0 %v812_v37 }
 0x4a0   :  { %847 = vmatmul.bf16.vlgmr.msra.gmra.mxu1 %v812_v37 }
 0x51c   :  { %v835_v28 = vpop.f32.mrf.mxu0 }
 0x51d   :  { %v848_v11 = vpop.f32.mrf.mxu1  ;;  %v853_v53 = vadd.f32 %v835_v28, %v155_v23 }
 0x51e   :  { %v862_v33 = vadd.f32 %v1626_v5, %v848_v11  ;;  %v1165_v5 = vld [vmem:[%s1842_s7] ss:$0 sm:$0xff] }
 0x51f   :  { %v855_v56 = vmul.f32 0.5, %v853_v53 }
 0x522   :  { %v822_v29 = vpop.f32.mrf.mxu3 }
 0x523   :  { %v852_v31 = vadd.f32 %v822_v29, %v1620_v62 }
 0x524   :  { %v837_v35 = vpop.f32.mrf.mxu0 }
 0x525   :  { %v854_v42 = vmul.f32 0.5, %v852_v31  ;;  %v850_v40 = vpop.f32.mrf.mxu1 }
 0x527   :  { %1208 = vtanh.f32 %v854_v42 }
 0x528   :  { %1210 = vtanh.f32 %v855_v56 }
 0x52a   :  { %v824_v4 = vpop.f32.mrf.mxu3 }
 0x52d   :  { %v1209_v36 = vpop.eup %1208 }
 0x52e   :  { %v858_v49 = vmul.f32 0.5, %v1209_v36  ;;  %v1211_v60 = vpop.eup %1210 }
 0x52f   :  { %v859_v52 = vmul.f32 0.5, %v1211_v60 }
 0x530   :  { %v860_v3 = vadd.f32 0.5, %v858_v49 }
 0x531   :  { %v861_v62 = vadd.f32 0.5, %v859_v52 }
 0x532   :  { %v863_v50 = vmul.f32 %v862_v33, %v860_v3 }
 0x533   :  { %v866_v18 = vsub.f32 1.0, %v861_v62  ;;  %v868_v44 = vmul.f32 %v861_v62, %v808_v51 }
 0x534   :  { %v864_v43 = vadd.f32 %v863_v50, %v184_v16 }
 0x536   :  { %1212 = vtanh.f32 %v864_v43 }
 0x53c   :  { %v1213_v34 = vpop.eup %1212 }
 0x53d   :  { %v867_v54 = vmul.f32 %v1213_v34, %v866_v18 }
 0x53f   :  { %v869_v46 = vadd.f32 %v868_v44, %v867_v54 }
 0x541   :  { %v870_v47 = vpack.c.bf16 %v869_v46, %v869_v46 }
 0x543   :  { %947 = vmatmul.bf16.vlgmr.msra.gmra.mxu2 %v870_v47 }
 0x5c6   :  { %v948_v7 = vpop.f32.mrf.mxu2 }
 0x5c7   :  { %v949_v9 = vadd.f32 %v1165_v5, %v948_v7 }
 0x5c9   :  { %952 = vst [vmem:[%s1844_s8] sm:$0xff] %v949_v9 }
 0x5ce   :  { %v950_v8 = vpop.f32.mrf.mxu2 }

</bundles_post_ra>
